<compile_context>
chip_gen: v7x
topology: tpu7x:2x2x1
jax: 0.10.0
libtpu: 0.0.40
codegen_flags: <defaults>
</compile_context>

<pallas_src>
import functools
import numpy as np
import jax
import jax.numpy as jnp
from jax.experimental import pallas as pl
from jax.experimental.pallas import tpu as pltpu


# ----------------------------- Pallas kernel ------------------------------- #
def _window_attn_kernel(x_ref, bias_ref, wq_ref, wk_ref, wv_ref, wout_ref,
                        bout_ref, o_ref, *, heads):
    # x_ref:    (N, D)            all tokens of all batch elements, original order
    # bias_ref: (N, N)            dense additive bias; -1e30 kills cross-window/batch
    # wq_ref:   (heads, D, inner) per-head Q weights (scale folded, other-head cols 0)
    # wk_ref:   (D, inner)        shared K weights
    # wv_ref:   (heads, D, inner) per-head V weights (other-head cols 0)
    # wout_ref: (inner, D)
    # bout_ref: (1, D)
    # o_ref:    (N, D)
    x = x_ref[...]                                                        # (N, D) f32
    bias = bias_ref[...]                                                  # (N, N)

    # Shared key projection (one 128-row MXU matmul).
    k = jnp.dot(x, wk_ref[...], preferred_element_type=jnp.float32)      # (N, inner)

    acc = None
    for h in range(heads):                     # static, tiny unrolled loop (heads=2)
        # Per-head Q/V: non-head columns of the weights are zero, so the contraction
        # below only sees this head's dims — no in-kernel slicing or lane masking.
        qh = jnp.dot(x, wq_ref[h], preferred_element_type=jnp.float32)   # (N, inner)
        # Dense scores for ALL token pairs: one (N, inner)x(inner, N) MXU matmul,
        # full 128-lane rows for the whole softmax path.
        s = jnp.einsum('ne,me->nm', qh, k,
                       preferred_element_type=jnp.float32) + bias        # (N, N)
        s = s - jnp.max(s, axis=-1, keepdims=True)
        p = jnp.exp(s)                         # masked entries underflow to exactly 0
        p = p * pl.reciprocal(jnp.sum(p, axis=-1, keepdims=True), approx=True)
        vh = jnp.dot(x, wv_ref[h], preferred_element_type=jnp.float32)   # (N, inner)
        oh = jnp.dot(p, vh, preferred_element_type=jnp.float32)          # (N, inner)
        acc = oh if acc is None else acc + oh  # heads occupy disjoint lanes -> concat

    # Output projection over all tokens at once (128-row LHS).
    y = jnp.dot(acc, wout_ref[...], preferred_element_type=jnp.float32) + bout_ref[...]
    o_ref[...] = y.astype(o_ref.dtype)


# ------------------------------ JAX wrapper -------------------------------- #
def window_attention(x, params, *, heads, head_dim, window_size, shifted,
                     relative_pos_embedding):
    B, n_h, n_w, dim = x.shape
    ws0, ws1 = window_size
    T = ws0 * ws1
    nw_h, nw_w = n_h // ws0, n_w // ws1
    inner = heads * head_dim
    scale = head_dim ** (-0.5)
    S = n_h * n_w                 # tokens per batch element
    N = B * S                     # total token rows handed to the kernel
    assert N % 8 == 0             # sublane alignment of the fused token slab

    # ---- static per-position window assignment (cyclic shift folded in) -----
    d0 = ws0 // 2 if shifted else 0
    d1 = ws1 // 2 if shifted else 0
    ho, wo = np.meshgrid(np.arange(n_h), np.arange(n_w), indexing="ij")
    hr = (ho - d0) % n_h          # position after torch.roll(shift=(-d0,-d1))
    wr = (wo - d1) % n_w
    wh = (hr // ws0).reshape(-1)                      # (S,) window row index
    ww = (wr // ws1).reshape(-1)                      # (S,) window col index
    ti = ((hr % ws0) * ws1 + (wr % ws1)).reshape(-1)  # (S,) token index inside window
    win = wh * nw_w + ww                              # (S,) flat window id

    # ---- dense (N, N) additive bias: pos-emb + shift masks on same-window pairs,
    #      finite large-negative everywhere else (cross-window and cross-batch) -----
    if relative_pos_embedding:
        ri = params["relative_indices"]                               # (T, T, 2) numpy
        pos_bias = params["pos_embedding"][ri[..., 0], ri[..., 1]]    # (T, T)
    else:
        pos_bias = params["pos_embedding"]                            # (T, T)
    bias_pair = pos_bias[ti[:, None], ti[None, :]]                    # (S, S)
    if shifted:
        ul_row = jnp.asarray((wh == nw_h - 1).astype(np.float32))[:, None]
        lr_row = jnp.asarray((ww == nw_w - 1).astype(np.float32))[:, None]
        bias_pair = (bias_pair
                     + ul_row * params["upper_lower_mask"][ti[:, None], ti[None, :]]
                     + lr_row * params["left_right_mask"][ti[:, None], ti[None, :]])
    same_win = (win[:, None] == win[None, :])                         # (S, S) numpy bool
    keep = np.zeros((N, N), dtype=bool)                               # same batch & window
    for b in range(B):
        keep[b * S:(b + 1) * S, b * S:(b + 1) * S] = same_win
    NEG = jnp.float32(-1e30)      # finite: no -inf -> no NaN in max-subtract / exp
    bias_full = jnp.where(jnp.asarray(keep),
                          jnp.tile(bias_pair, (B, B)), NEG).astype(jnp.float32)

    # ---- weights: split fused qkv in the wrapper (no in-kernel lane slicing),
    #      zero other-head columns, fold softmax scale into Wq -------------------
    w_qkv = params["w_qkv"].astype(jnp.float32)                       # (dim, 3*inner)
    w_q = w_qkv[:, :inner]
    w_k = w_qkv[:, inner:2 * inner]
    w_v = w_qkv[:, 2 * inner:]
    head_of_col = np.arange(inner) // head_dim
    head_mask = (head_of_col[None, :] ==
                 np.arange(heads)[:, None]).astype(np.float32)        # (heads, inner)
    hm = jnp.asarray(head_mask)[:, None, :]                           # (heads, 1, inner)
    wq_h = (w_q[None] * hm) * scale                                   # (heads, dim, inner)
    wv_h = w_v[None] * hm                                             # (heads, dim, inner)
    w_out = params["w_out"].astype(jnp.float32)                       # (inner, dim)
    b_out = params["b_out"].reshape(1, dim).astype(jnp.float32)

    # Free reshape only — roll / window partition live in `bias_full`.
    x_flat = x.reshape(N, dim).astype(jnp.float32)

    kernel = functools.partial(_window_attn_kernel, heads=heads)

    out_flat = pl.pallas_call(
        kernel,
        out_shape=jax.ShapeDtypeStruct((N, dim), jnp.float32),
        grid_spec=pltpu.PrefetchScalarGridSpec(
            num_scalar_prefetch=0,
            grid=(1,),                                    # one fat step (single TC suffices)
            in_specs=[
                pl.BlockSpec((N, dim), lambda i: (0, 0)),            # tokens
                pl.BlockSpec((N, N), lambda i: (0, 0)),              # dense bias, resident
                pl.BlockSpec((heads, dim, inner), lambda i: (0, 0, 0)),  # Wq per head
                pl.BlockSpec((dim, inner), lambda i: (0, 0)),            # Wk
                pl.BlockSpec((heads, dim, inner), lambda i: (0, 0, 0)),  # Wv per head
                pl.BlockSpec((inner, dim), lambda i: (0, 0)),            # Wout
                pl.BlockSpec((1, dim), lambda i: (0, 0)),                # bout
            ],
            out_specs=pl.BlockSpec((N, dim), lambda i: (0, 0)),
        ),
        compiler_params=pltpu.CompilerParams(
            dimension_semantics=("arbitrary",)),
    )(x_flat, bias_full, wq_h, w_k, wv_h, w_out, b_out)

    # Free reshape only — rows already come back in original (b, h, w) order.
    return out_flat.reshape(B, n_h, n_w, dim)


# ---------------------------- pure-JAX reference --------------------------- #
def window_attention_ref(x, params, *, heads, head_dim, window_size, shifted,
                         relative_pos_embedding):
    B, n_h, n_w, dim = x.shape
    ws0, ws1 = window_size
    T = ws0 * ws1
    nw_h, nw_w = n_h // ws0, n_w // ws1
    inner = heads * head_dim
    scale = head_dim ** (-0.5)

    if shifted:
        x = jnp.roll(x, shift=(-(ws0 // 2), -(ws1 // 2)), axis=(1, 2))

    qkv = x @ params["w_qkv"]                           # (B, n_h, n_w, 3*inner)
    q, k, v = jnp.split(qkv, 3, axis=-1)

    def to_win(t):
        t = t.reshape(B, nw_h, ws0, nw_w, ws1, heads, head_dim)
        t = t.transpose(0, 5, 1, 3, 2, 4, 6)            # b h nw_h nw_w w_h w_w d
        return t.reshape(B, heads, nw_h * nw_w, T, head_dim)

    q, k, v = map(to_win, (q, k, v))
    dots = jnp.einsum('bhwid,bhwjd->bhwij', q, k) * scale

    if relative_pos_embedding:
        ri = params["relative_indices"]
        dots = dots + params["pos_embedding"][ri[..., 0], ri[..., 1]]
    else:
        dots = dots + params["pos_embedding"]

    if shifted:
        dots = dots.at[:, :, -nw_w:].add(params["upper_lower_mask"])
        dots = dots.at[:, :, nw_w - 1::nw_w].add(params["left_right_mask"])

    attn = jax.nn.softmax(dots, axis=-1)
    out = jnp.einsum('bhwij,bhwjd->bhwid', attn, v)
    out = out.reshape(B, heads, nw_h, nw_w, ws0, ws1, head_dim)
    out = out.transpose(0, 2, 4, 3, 5, 1, 6).reshape(B, n_h, n_w, inner)
    out = out @ params["w_out"] + params["b_out"]
    if shifted:
        out = jnp.roll(out, shift=(ws0 // 2, ws1 // 2), axis=(1, 2))
    return out


# ----------------------------------- main ----------------------------------- #
if __name__ == "__main__":
    # module config
    dim, heads, head_dim = 32, 2, 16
    window_size = (4, 4)
    shifted = True
    relative_pos_embedding = True
    inner = heads * head_dim
    T = window_size[0] * window_size[1]

    # input: (B, n_h, n_w, dim) channels-last, small
    B, n_h, n_w = 2, 8, 8
    key = jax.random.PRNGKey(0)
    k_x, k_qkv, k_out, k_bo, k_pe, k_ul, k_lr = jax.random.split(key, 7)
    x = jax.random.normal(k_x, (B, n_h, n_w, dim), dtype=jnp.float32)

    # relative index table (static, numpy) — matches get_relative_distances + offset
    idx = np.array([[a, b] for a in range(window_size[0]) for b in range(window_size[1])])
    rel = idx[None, :, :] - idx[:, None, :]
    rel[:, :, 0] += window_size[0] - 1
    rel[:, :, 1] += window_size[1] - 1

    # deterministic synthetic parameters (std ~0.02, as trunc_normal_ in __init__;
    # note: __init__ overwrites the -inf masks with trunc_normal_, so masks are
    # plain small random tensors here too).
    params = {
        "w_qkv": jax.random.normal(k_qkv, (dim, 3 * inner), dtype=jnp.float32) * 0.02,
        "w_out": jax.random.normal(k_out, (inner, dim), dtype=jnp.float32) * 0.02,
        "b_out": jax.random.normal(k_bo, (dim,), dtype=jnp.float32) * 0.02,
        "pos_embedding": jax.random.normal(
            k_pe, (2 * window_size[0] - 1, 2 * window_size[1] - 1), dtype=jnp.float32) * 0.02,
        "upper_lower_mask": jax.random.normal(k_ul, (T, T), dtype=jnp.float32) * 0.02,
        "left_right_mask": jax.random.normal(k_lr, (T, T), dtype=jnp.float32) * 0.02,
        "relative_indices": rel,
    }

    cfg = dict(heads=heads, head_dim=head_dim, window_size=window_size,
               shifted=shifted, relative_pos_embedding=relative_pos_embedding)

    out = window_attention(x, params, **cfg)
    out = jax.block_until_ready(out)

    ref = jax.block_until_ready(window_attention_ref(x, params, **cfg))
    assert out.shape == (B, n_h, n_w, dim)
    # slightly relaxed vs exact-divide softmax: the kernel uses the EUP approximate
    # reciprocal for the softmax denominator (error well below this bound).
    np.testing.assert_allclose(np.asarray(out), np.asarray(ref), rtol=1e-3, atol=2e-4)

    print("KERNEL_OK")
</pallas_src>

<mosaic_0001>
module attributes {stable_mosaic.version = 11 : i64} {
  func.func @_window_attn_kernel(%arg0: i32, %arg1: memref<128x32xf32, #tpu.memory_space<vmem>>, %arg2: memref<128x128xf32, #tpu.memory_space<vmem>>, %arg3: memref<2x32x32xf32, #tpu.memory_space<vmem>>, %arg4: memref<32x32xf32, #tpu.memory_space<vmem>>, %arg5: memref<2x32x32xf32, #tpu.memory_space<vmem>>, %arg6: memref<32x32xf32, #tpu.memory_space<vmem>>, %arg7: memref<1x32xf32, #tpu.memory_space<vmem>>, %arg8: memref<128x32xf32, #tpu.memory_space<vmem>>) attributes {dimension_semantics = [#tpu.dimension_semantics<arbitrary>], iteration_bounds = array<i64: 1>, scalar_prefetch = 0 : i64, scratch_operands = 0 : i64, tpu.core_type = #tpu.core_type<tc>, window_params = [{pipeline_mode = #tpu.pipeline_mode<synchronous>, transform_indices = @transform_0, window_bounds = array<i64: 128, 32>}, {pipeline_mode = #tpu.pipeline_mode<synchronous>, transform_indices = @transform_1, window_bounds = array<i64: 128, 128>}, {pipeline_mode = #tpu.pipeline_mode<synchronous>, transform_indices = @transform_2, window_bounds = array<i64: 2, 32, 32>}, {pipeline_mode = #tpu.pipeline_mode<synchronous>, transform_indices = @transform_3, window_bounds = array<i64: 32, 32>}, {pipeline_mode = #tpu.pipeline_mode<synchronous>, transform_indices = @transform_4, window_bounds = array<i64: 2, 32, 32>}, {pipeline_mode = #tpu.pipeline_mode<synchronous>, transform_indices = @transform_5, window_bounds = array<i64: 32, 32>}, {pipeline_mode = #tpu.pipeline_mode<synchronous>, transform_indices = @transform_6, window_bounds = array<i64: 1, 32>}, {pipeline_mode = #tpu.pipeline_mode<synchronous>, transform_indices = @transform_7, window_bounds = array<i64: 128, 32>}]} {
    %c0 = arith.constant 0 : index
    %c0_0 = arith.constant 0 : index
    %0 = vector.load %arg1[%c0, %c0_0] : memref<128x32xf32, #tpu.memory_space<vmem>>, vector<128x32xf32>
    %c0_1 = arith.constant 0 : index
    %c0_2 = arith.constant 0 : index
    %1 = vector.load %arg2[%c0_1, %c0_2] : memref<128x128xf32, #tpu.memory_space<vmem>>, vector<128x128xf32>
    %c0_3 = arith.constant 0 : index
    %c0_4 = arith.constant 0 : index
    %2 = vector.load %arg4[%c0_3, %c0_4] : memref<32x32xf32, #tpu.memory_space<vmem>>, vector<32x32xf32>
    %cst = arith.constant dense<0.000000e+00> : vector<128x32xf32>
    %3 = tpu.matmul %0, %2, %cst {dimension_numbers = #tpu.dot_dimension_numbers<[1], [0], [0], [1], [0, 0, 1, 1], [], []>} : vector<128x32xf32>, vector<32x32xf32>, vector<128x32xf32> -> vector<128x32xf32>
    %c0_5 = arith.constant 0 : index
    %c0_6 = arith.constant 0 : index
    %c0_7 = arith.constant 0 : index
    %4 = vector.load %arg3[%c0_5, %c0_6, %c0_7] : memref<2x32x32xf32, #tpu.memory_space<vmem>>, vector<1x32x32xf32>
    %5 = vector.shape_cast %4 : vector<1x32x32xf32> to vector<32x32xf32>
    %cst_8 = arith.constant dense<0.000000e+00> : vector<128x32xf32>
    %6 = tpu.matmul %0, %5, %cst_8 {dimension_numbers = #tpu.dot_dimension_numbers<[1], [0], [0], [1], [0, 0, 1, 1], [], []>} : vector<128x32xf32>, vector<32x32xf32>, vector<128x32xf32> -> vector<128x32xf32>
    "tpu.trace_start"() <{level = 10 : i32, message = "ne,me->nm"}> : () -> ()
    %cst_9 = arith.constant dense<0.000000e+00> : vector<128x128xf32>
    %7 = tpu.matmul %6, %3, %cst_9 {dimension_numbers = #tpu.dot_dimension_numbers<[1], [1], [0], [0], [0, 0, 1, 0], [], []>} : vector<128x32xf32>, vector<128x32xf32>, vector<128x128xf32> -> vector<128x128xf32>
    "tpu.trace_stop"() : () -> ()
    %8 = arith.addf %7, %1 : vector<128x128xf32>
    %cst_10 = arith.constant dense<0xFF800000> : vector<128xf32>
    %9 = vector.multi_reduction <maximumf>, %8, %cst_10 [1] : vector<128x128xf32> to vector<128xf32>
    %10 = vector.shape_cast %9 : vector<128xf32> to vector<128x1xf32>
    %11 = vector.broadcast %10 : vector<128x1xf32> to vector<128x128xf32>
    %12 = arith.subf %8, %11 : vector<128x128xf32>
    %13 = math.exp %12 : vector<128x128xf32>
    %cst_11 = arith.constant dense<0.000000e+00> : vector<128xf32>
    %14 = vector.multi_reduction <add>, %13, %cst_11 [1] : vector<128x128xf32> to vector<128xf32>
    %15 = vector.shape_cast %14 : vector<128xf32> to vector<128x1xf32>
    %16 = tpu.reciprocal %15 {approx = true} : vector<128x1xf32> -> vector<128x1xf32>
    %17 = vector.broadcast %16 : vector<128x1xf32> to vector<128x128xf32>
    %18 = arith.mulf %13, %17 : vector<128x128xf32>
    %c0_12 = arith.constant 0 : index
    %c0_13 = arith.constant 0 : index
    %c0_14 = arith.constant 0 : index
    %19 = vector.load %arg5[%c0_12, %c0_13, %c0_14] : memref<2x32x32xf32, #tpu.memory_space<vmem>>, vector<1x32x32xf32>
    %20 = vector.shape_cast %19 : vector<1x32x32xf32> to vector<32x32xf32>
    %cst_15 = arith.constant dense<0.000000e+00> : vector<128x32xf32>
    %21 = tpu.matmul %0, %20, %cst_15 {dimension_numbers = #tpu.dot_dimension_numbers<[1], [0], [0], [1], [0, 0, 1, 1], [], []>} : vector<128x32xf32>, vector<32x32xf32>, vector<128x32xf32> -> vector<128x32xf32>
    %cst_16 = arith.constant dense<0.000000e+00> : vector<128x32xf32>
    %22 = tpu.matmul %18, %21, %cst_16 {dimension_numbers = #tpu.dot_dimension_numbers<[1], [0], [0], [1], [0, 0, 1, 1], [], []>} : vector<128x128xf32>, vector<128x32xf32>, vector<128x32xf32> -> vector<128x32xf32>
    %c1 = arith.constant 1 : index
    %c0_17 = arith.constant 0 : index
    %c0_18 = arith.constant 0 : index
    %23 = vector.load %arg3[%c1, %c0_17, %c0_18] : memref<2x32x32xf32, #tpu.memory_space<vmem>>, vector<1x32x32xf32>
    %24 = vector.shape_cast %23 : vector<1x32x32xf32> to vector<32x32xf32>
    %cst_19 = arith.constant dense<0.000000e+00> : vector<128x32xf32>
    %25 = tpu.matmul %0, %24, %cst_19 {dimension_numbers = #tpu.dot_dimension_numbers<[1], [0], [0], [1], [0, 0, 1, 1], [], []>} : vector<128x32xf32>, vector<32x32xf32>, vector<128x32xf32> -> vector<128x32xf32>
    "tpu.trace_start"() <{level = 10 : i32, message = "ne,me->nm"}> : () -> ()
    %cst_20 = arith.constant dense<0.000000e+00> : vector<128x128xf32>
    %26 = tpu.matmul %25, %3, %cst_20 {dimension_numbers = #tpu.dot_dimension_numbers<[1], [1], [0], [0], [0, 0, 1, 0], [], []>} : vector<128x32xf32>, vector<128x32xf32>, vector<128x128xf32> -> vector<128x128xf32>
    "tpu.trace_stop"() : () -> ()
    %27 = arith.addf %26, %1 : vector<128x128xf32>
    %cst_21 = arith.constant dense<0xFF800000> : vector<128xf32>
    %28 = vector.multi_reduction <maximumf>, %27, %cst_21 [1] : vector<128x128xf32> to vector<128xf32>
    %29 = vector.shape_cast %28 : vector<128xf32> to vector<128x1xf32>
    %30 = vector.broadcast %29 : vector<128x1xf32> to vector<128x128xf32>
    %31 = arith.subf %27, %30 : vector<128x128xf32>
    %32 = math.exp %31 : vector<128x128xf32>
    %cst_22 = arith.constant dense<0.000000e+00> : vector<128xf32>
    %33 = vector.multi_reduction <add>, %32, %cst_22 [1] : vector<128x128xf32> to vector<128xf32>
    %34 = vector.shape_cast %33 : vector<128xf32> to vector<128x1xf32>
    %35 = tpu.reciprocal %34 {approx = true} : vector<128x1xf32> -> vector<128x1xf32>
    %36 = vector.broadcast %35 : vector<128x1xf32> to vector<128x128xf32>
    %37 = arith.mulf %32, %36 : vector<128x128xf32>
    %c1_23 = arith.constant 1 : index
    %c0_24 = arith.constant 0 : index
    %c0_25 = arith.constant 0 : index
    %38 = vector.load %arg5[%c1_23, %c0_24, %c0_25] : memref<2x32x32xf32, #tpu.memory_space<vmem>>, vector<1x32x32xf32>
    %39 = vector.shape_cast %38 : vector<1x32x32xf32> to vector<32x32xf32>
    %cst_26 = arith.constant dense<0.000000e+00> : vector<128x32xf32>
    %40 = tpu.matmul %0, %39, %cst_26 {dimension_numbers = #tpu.dot_dimension_numbers<[1], [0], [0], [1], [0, 0, 1, 1], [], []>} : vector<128x32xf32>, vector<32x32xf32>, vector<128x32xf32> -> vector<128x32xf32>
    %cst_27 = arith.constant dense<0.000000e+00> : vector<128x32xf32>
    %41 = tpu.matmul %37, %40, %cst_27 {dimension_numbers = #tpu.dot_dimension_numbers<[1], [0], [0], [1], [0, 0, 1, 1], [], []>} : vector<128x128xf32>, vector<128x32xf32>, vector<128x32xf32> -> vector<128x32xf32>
    %42 = arith.addf %22, %41 : vector<128x32xf32>
    %c0_28 = arith.constant 0 : index
    %c0_29 = arith.constant 0 : index
    %43 = vector.load %arg6[%c0_28, %c0_29] : memref<32x32xf32, #tpu.memory_space<vmem>>, vector<32x32xf32>
    %cst_30 = arith.constant dense<0.000000e+00> : vector<128x32xf32>
    %44 = tpu.matmul %42, %43, %cst_30 {dimension_numbers = #tpu.dot_dimension_numbers<[1], [0], [0], [1], [0, 0, 1, 1], [], []>} : vector<128x32xf32>, vector<32x32xf32>, vector<128x32xf32> -> vector<128x32xf32>
    %c0_31 = arith.constant 0 : index
    %c0_32 = arith.constant 0 : index
    %45 = vector.load %arg7[%c0_31, %c0_32] : memref<1x32xf32, #tpu.memory_space<vmem>>, vector<1x32xf32>
    %46 = vector.broadcast %45 : vector<1x32xf32> to vector<128x32xf32>
    %47 = arith.addf %44, %46 : vector<128x32xf32>
    %c0_33 = arith.constant 0 : index
    %c0_34 = arith.constant 0 : index
    %48 = vector.load %arg8[%c0_33, %c0_34] : memref<128x32xf32, #tpu.memory_space<vmem>>, vector<128x32xf32>
    tpu.vector_store %arg8[%c0_33, %c0_34], %47 {strides = array<i32>} : memref<128x32xf32, #tpu.memory_space<vmem>>, vector<128x32xf32>,
    return
  }
  func.func @transform_0(%arg0: i32) -> (i32, i32) {
    %c0_i32 = arith.constant 0 : i32
    %c0_i32_0 = arith.constant 0 : i32
    %c0_i32_1 = arith.constant 0 : i32
    return %c0_i32, %c0_i32_0 : i32, i32
  }
  func.func @transform_1(%arg0: i32) -> (i32, i32) {
    %c0_i32 = arith.constant 0 : i32
    %c0_i32_0 = arith.constant 0 : i32
    %c0_i32_1 = arith.constant 0 : i32
    return %c0_i32, %c0_i32_0 : i32, i32
  }
  func.func @transform_2(%arg0: i32) -> (i32, i32, i32) {
    %c0_i32 = arith.constant 0 : i32
    %c0_i32_0 = arith.constant 0 : i32
    %c0_i32_1 = arith.constant 0 : i32
    %c0_i32_2 = arith.constant 0 : i32
    return %c0_i32, %c0_i32_0, %c0_i32_1 : i32, i32, i32
  }
  func.func @transform_3(%arg0: i32) -> (i32, i32) {
    %c0_i32 = arith.constant 0 : i32
    %c0_i32_0 = arith.constant 0 : i32
    %c0_i32_1 = arith.constant 0 : i32
    return %c0_i32, %c0_i32_0 : i32, i32
  }
  func.func @transform_4(%arg0: i32) -> (i32, i32, i32) {
    %c0_i32 = arith.constant 0 : i32
    %c0_i32_0 = arith.constant 0 : i32
    %c0_i32_1 = arith.constant 0 : i32
    %c0_i32_2 = arith.constant 0 : i32
    return %c0_i32, %c0_i32_0, %c0_i32_1 : i32, i32, i32
  }
  func.func @transform_5(%arg0: i32) -> (i32, i32) {
    %c0_i32 = arith.constant 0 : i32
    %c0_i32_0 = arith.constant 0 : i32
    %c0_i32_1 = arith.constant 0 : i32
    return %c0_i32, %c0_i32_0 : i32, i32
  }
  func.func @transform_6(%arg0: i32) -> (i32, i32) {
    %c0_i32 = arith.constant 0 : i32
    %c0_i32_0 = arith.constant 0 : i32
    %c0_i32_1 = arith.constant 0 : i32
    return %c0_i32, %c0_i32_0 : i32, i32
  }
  func.func @transform_7(%arg0: i32) -> (i32, i32) {
    %c0_i32 = arith.constant 0 : i32
    %c0_i32_0 = arith.constant 0 : i32
    %c0_i32_1 = arith.constant 0 : i32
    return %c0_i32, %c0_i32_0 : i32, i32
  }
}

</mosaic_0001>

<bundles_post_ra>
// kernel: tpu_custom_call.1
= control target key start
LH: loop header
LB: loop body
LE: loop exit
PB: predicated region body
PF: predicated region fallthrough
CT: control target
= control target key end

     0   :  { %12 = vsyncpa [#allocation3], 0  ;;  %s4441_s0 = inlined_call_operand.vmem [shape: f32[128,32], index: 0, kind: input, shape index: {}]   ;;  %s4442_s1 = inlined_call_operand.vmem [shape: f32[128,128], index: 1, kind: input, shape index: {}]   ;;  %s4443_s2 = inlined_call_operand.hbm [shape: f32[2,32,32], index: 2, kind: input, shape index: {}]   ;;  %s4444_s3 = inlined_call_operand.vmem [shape: f32[32,32], index: 3, kind: input, shape index: {}]   ;;  %s4445_s4 = inlined_call_operand.hbm [shape: f32[2,32,32], index: 4, kind: input, shape index: {}]   ;;  %s4446_s5 = inlined_call_operand.hbm [shape: f32[32,32], index: 5, kind: input, shape index: {}]   ;;  %s4447_s6 = inlined_call_operand.vmem [shape: f32[1,32], index: 6, kind: input, shape index: {}]   ;;  %s4448_s7 = inlined_call_operand.vmem [shape: f32[128,32], index: 7, kind: output, shape index: {}]  }
   0x1   :  { %13 = vsyncpa [#allocation5], 0  ;;  %s3385_s24 = smov [#allocation4]   ;;  %s3386_s26 = smov [#allocation2]  }
   0x2   :  { %s37_s25 = sshll.u32 %s3385_s24, 4  ;;  %s23_s27 = sshll.u32 %s3386_s26, 4  ;;  %s38_s25 = int_to_ptr.vmem [resolvable:$true] %s37_s25  ;;  %s3430_s27 = int_to_ptr.vmem [resolvable:$true] %s23_s27 }
   0x3   :  { %s3315_s30 = scalar_lea.hbm %s4445_s4, 1024 }
   0x4   :  { %p3316_p0 = scmp.ne.s32.totalorder %s4445_s4, %s3315_s30  ;;  %p3319_p1 = scmp.lt.u32.totalorder %s3315_s30, %s4445_s4 }
   0x6   :  { %p3321_p2 = pnand %p3319_p1, %p3316_p0 }
   0x8   :  { %3324 = shalt.err (!%p3321_p2)
}
   0x9   :  { %s3325_s12 = scalar_lea.vmem %s38_s25, 1024  ;;  %p3330_p4 = scmp.lt.s32.totalorder %s38_s25, %s38_s25 }
   0xa   :  { %p3326_p3 = scmp.ne.s32.totalorder %s38_s25, %s3325_s12  ;;  %p3331_p5 = scmp.lt.s32.totalorder %s3325_s12, %s3325_s12 }
   0xc   :  { %p3332_p6 = por %p3331_p5, %p3330_p4 }
   0xe   :  { %p3333_p7 = pnand %p3332_p6, %p3326_p3 }
  0x10   :  { %3336 = shalt.err (!%p3333_p7)
}
  0x11   :  { %s3387_s13 = smov 128   ;;  %s3388_s14 = smov 8  }
  0x12   :  { %43 = dma.hbm_to_vmem [thread:$0]  %s4445_s4, 1024, %s38_s25, [#allocation5], %s3387_s13, %s3387_s13, %s3388_s14  }
  0x13   :  { %s3337_s19 = scalar_lea.hbm %s4443_s2, 1024 }
  0x14   :  { %p3338_p8 = scmp.ne.s32.totalorder %s4443_s2, %s3337_s19  ;;  %p3341_p9 = scmp.lt.u32.totalorder %s3337_s19, %s4443_s2 }
  0x16   :  { %p3343_p10 = pnand %p3341_p9, %p3338_p8 }
  0x18   :  { %3346 = shalt.err (!%p3343_p10)
}
  0x19   :  { %s3347_s24 = scalar_lea.vmem %s3430_s27, 1024  ;;  %p3352_p12 = scmp.lt.s32.totalorder %s3430_s27, %s3430_s27 }
  0x1a   :  { %p3348_p11 = scmp.ne.s32.totalorder %s3430_s27, %s3347_s24  ;;  %p3353_p13 = scmp.lt.s32.totalorder %s3347_s24, %s3347_s24 }
  0x1c   :  { %p3354_p0 = por %p3353_p13, %p3352_p12 }
  0x1e   :  { %p3355_p1 = pnand %p3354_p0, %p3348_p11 }
  0x20   :  { %3358 = shalt.err (!%p3355_p1)
}
  0x21   :  { %29 = dma.hbm_to_vmem [thread:$0]  %s4443_s2, 1024, %s3430_s27, [#allocation3], %s3387_s13, %s3387_s13, %s3388_s14  }
  0x22   :  { %s3389_s26 = smov [#allocation6]   ;;  %s3359_s8 = scalar_lea.hbm %s4446_s5, 512 }
  0x23   :  { %s49_s28 = sshll.u32 %s3389_s26, 4  ;;  %p3360_p2 = scmp.ne.s32.totalorder %s4446_s5, %s3359_s8  ;;  %s50_s28 = int_to_ptr.vmem [resolvable:$true] %s49_s28 }
  0x24   :  { %p3363_p3 = scmp.lt.u32.totalorder %s3359_s8, %s4446_s5 }
  0x26   :  { %p3365_p4 = pnand %p3363_p3, %p3360_p2 }
  0x28   :  { %3368 = shalt.err (!%p3365_p4)
}
  0x29   :  { %s3369_s15 = scalar_lea.vmem %s50_s28, 512  ;;  %p3374_p6 = scmp.lt.s32.totalorder %s50_s28, %s50_s28 }
  0x2a   :  { %p3370_p5 = scmp.ne.s32.totalorder %s50_s28, %s3369_s15  ;;  %p3375_p7 = scmp.lt.s32.totalorder %s3369_s15, %s3369_s15 }
  0x2c   :  { %p3376_p8 = por %p3375_p7, %p3374_p6 }
  0x2e   :  { %p3377_p9 = pnand %p3376_p8, %p3370_p5 }
  0x30   :  { %3380 = shalt.err (!%p3377_p9)
}
  0x31   :  { %55 = dma.hbm_to_vmem [thread:$0]  %s4446_s5, 512, %s50_s28, [#allocation5], %s3387_s13, %s3387_s13, %s3388_s14  }
  0x32   :  { %3381 = dma.done.wait [#allocation3], 1024  }
  0x33   :  { %3382 = vsyncadd [#allocation3], 4294966272 }
  0x34   :  { %3383 = dma.done.wait [#allocation5], 1536  }
  0x35   :  { %3384 = vsyncadd [#allocation5], 4294965760  ;;  %v99_v0 = vld [vmem:[%s4444_s3] sm:$0xff]  ;;  %v100_v1 = vld [vmem:[%s4444_s3 + $0x8] sm:$0xff]  ;;  %vm103_vm0 = vcmask 261120  }
  0x36   :  { %v297_v2 = vld [vmem:[#allocation2] sm:$0xff]  ;;  %v2958_v3 = vpack.c.bf16 %v100_v1, %v99_v0  ;;  %v298_v4 = vld [vmem:[#allocation2 + $0x8] sm:$0xff]  ;;  %v101_v5 = vld [vmem:[%s4444_s3 + $0x10] sm:$0xff] }
  0x37   :  { %v102_v6 = vld [vmem:[%s4444_s3 + $0x18] sm:$0xff]  ;;  %v2966_v7 = vpack.c.bf16 %v298_v4, %v297_v2  ;;  %v299_v9 = vld [vmem:[#allocation2 + $0x10] sm:$0xff]  ;;  %v3497_v11 = vld [vmem:[%s4441_s0] sm:$0xff] }
  0x38   :  { %v2962_v8 = vpack.c.bf16 %v102_v6, %v101_v5  ;;  %v300_v10 = vld [vmem:[#allocation2 + $0x18] sm:$0xff]  ;;  %2959 = vmatprep.subr.bf16.mxu0 %v2958_v3  ;;  %2550 = vmatprep.mubr.msk.f32.mxu0 %vm103_vm0, %v3497_v11  ;;  %v831_v13 = vld [vmem:[#allocation4] sm:$0xff]  ;;  %v832_v14 = vld [vmem:[#allocation4 + $0x8] sm:$0xff] }
  0x39   :  { %v2970_v12 = vpack.c.bf16 %v300_v10, %v299_v9  ;;  %2967 = vmatprep.subr.bf16.mxu1 %v2966_v7  ;;  %2961 = vmatpush3.bf16.msra.mxu0 %v2958_v3  ;;  %v3506_v15 = vld [vmem:[%s4441_s0 + $0x8] sm:$0xff]  ;;  %v3022_v16 = vpack.c.bf16 %v832_v14, %v831_v13  ;;  %v833_v17 = vld [vmem:[#allocation4 + $0x10] sm:$0xff]  ;;  %v834_v18 = vld [vmem:[#allocation4 + $0x18] sm:$0xff] }
  0x3a   :  { %2969 = vmatpush3.bf16.msra.mxu1 %v2966_v7  ;;  %2963 = vmatprep.subr.bf16.mxu0 %v2962_v8  ;;  %v3511_v19 = vld [vmem:[%s4441_s0 + $0x10] sm:$0xff]  ;;  %v3026_v20 = vpack.c.bf16 %v834_v18, %v833_v17  ;;  %v981_v21 = vld [vmem:[#allocation2 + $0x20] sm:$0xff]  ;;  %v982_v22 = vld [vmem:[#allocation2 + $0x28] sm:$0xff] }
  0x3b   :  { %2971 = vmatprep.subr.bf16.mxu1 %v2970_v12  ;;  %2582 = vmatprep.mubr.msk.f32.mxu1 %vm103_vm0, %v3497_v11  ;;  %v3524_v23 = vld [vmem:[%s4441_s0 + $0x18] sm:$0xff]  ;;  %v3529_v24 = vld [vmem:[%s4441_s0 + $0x20] sm:$0xff]  ;;  %v3030_v25 = vpack.c.bf16 %v982_v22, %v981_v21  ;;  %v3542_v26 = vld [vmem:[%s4441_s0 + $0x28] sm:$0xff] }
  0x3c   :  { %v3547_v27 = vld [vmem:[%s4441_s0 + $0x30] sm:$0xff]  ;;  %v3560_v28 = vld [vmem:[%s4441_s0 + $0x38] sm:$0xff]  ;;  %v3565_v29 = vld [vmem:[%s4441_s0 + $0x40] sm:$0xff] }
  0x3d   :  { %2965 = vmatpush3.bf16.msra.mxu0 %v2962_v8  ;;  %v3578_v30 = vld [vmem:[%s4441_s0 + $0x48] sm:$0xff]  ;;  %v3583_v31 = vld [vmem:[%s4441_s0 + $0x50] sm:$0xff]  ;;  %v3596_v32 = vld [vmem:[%s4441_s0 + $0x58] sm:$0xff] }
  0x3e   :  { %2973 = vmatpush3.bf16.msra.mxu1 %v2970_v12  ;;  %v3601_v33 = vld [vmem:[%s4441_s0 + $0x60] sm:$0xff]  ;;  %v3614_v34 = vld [vmem:[%s4441_s0 + $0x68] sm:$0xff]  ;;  %v3619_v35 = vld [vmem:[%s4441_s0 + $0x70] sm:$0xff] }
  0x3f   :  { %3023 = vmatprep.subr.bf16.mxu1 %v3022_v16  ;;  %v3632_v36 = vld [vmem:[%s4441_s0 + $0x78] sm:$0xff]  ;;  %v983_v37 = vld [vmem:[#allocation2 + $0x30] sm:$0xff]  ;;  %v1468_v40 = vld [vmem:[#allocation4 + $0x20] sm:$0xff] }
  0x40   :  { %2551 = vmatmul.mubr.msk.f32.vlgmr.msra.gmra.mrb[0].mxu0 %vm103_vm0, %v3506_v15  ;;  %v984_v38 = vld [vmem:[#allocation2 + $0x38] sm:$0xff]  ;;  %v1469_v41 = vld [vmem:[#allocation4 + $0x28] sm:$0xff]  ;;  %v1470_v43 = vld [vmem:[#allocation4 + $0x30] sm:$0xff] }
  0x41   :  { %2583 = vmatmul.mubr.msk.f32.vlgmr.msra.gmra.mrb[0].mxu1 %vm103_vm0, %v3506_v15  ;;  %2553 = vmatprep.mubr.msk.f32.mxu0 %vm103_vm0, %v3511_v19  ;;  %v3034_v39 = vpack.c.bf16 %v984_v38, %v983_v37  ;;  %v3086_v42 = vpack.c.bf16 %v1469_v41, %v1468_v40  ;;  %v1471_v44 = vld [vmem:[#allocation4 + $0x38] sm:$0xff]  ;;  %vm3736_vm1 = vmpackc.low %vm103_vm0, %vm103_vm0 }
  0x42   :  { %2585 = vmatprep.mubr.msk.f32.mxu1 %vm103_vm0, %v3511_v19  ;;  %3025 = vmatpush3.bf16.msra.mxu1 %v3022_v16  ;;  %v3090_v45 = vpack.c.bf16 %v1471_v44, %v1470_v43 }
  0x43   :  { %3027 = vmatprep.subr.bf16.mxu1 %v3026_v20 }
  0x44   :  { %2554 = vmatmul.mubr.msk.f32.gmra.mrb[2].mxu0 %vm103_vm0, %v3524_v23 }
  0x45   :  { %2586 = vmatmul.mubr.msk.f32.gmra.mrb[2].mxu1 %vm103_vm0, %v3524_v23  ;;  %2556 = vmatprep.mubr.msk.f32.mxu0 %vm103_vm0, %v3529_v24 }
  0x46   :  { %2588 = vmatprep.mubr.msk.f32.mxu1 %vm103_vm0, %v3529_v24  ;;  %3029 = vmatpush3.bf16.msra.mxu1 %v3026_v20 }
  0x47   :  { %3031 = vmatprep.subr.bf16.mxu1 %v3030_v25 }
  0x48   :  { %2557 = vmatmul.mubr.msk.f32.gmra.mrb[4].mxu0 %vm103_vm0, %v3542_v26 }
  0x49   :  { %2589 = vmatmul.mubr.msk.f32.gmra.mrb[4].mxu1 %vm103_vm0, %v3542_v26  ;;  %2559 = vmatprep.mubr.msk.f32.mxu0 %vm103_vm0, %v3547_v27 }
  0x4a   :  { %2591 = vmatprep.mubr.msk.f32.mxu1 %vm103_vm0, %v3547_v27 }
  0x4c   :  { %2560 = vmatmul.mubr.msk.f32.gmra.mrb[6].mxu0 %vm103_vm0, %v3560_v28 }
  0x4d   :  { %2592 = vmatmul.mubr.msk.f32.gmra.mrb[6].mxu1 %vm103_vm0, %v3560_v28  ;;  %2562 = vmatprep.mubr.msk.f32.mxu0 %vm103_vm0, %v3565_v29 }
  0x4e   :  { %2594 = vmatprep.mubr.msk.f32.mxu1 %vm103_vm0, %v3565_v29 }
  0x50   :  { %2563 = vmatmul.mubr.msk.f32.gmra.mrb[8].mxu0 %vm103_vm0, %v3578_v30 }
  0x51   :  { %2595 = vmatmul.mubr.msk.f32.gmra.mrb[8].mxu1 %vm103_vm0, %v3578_v30  ;;  %2565 = vmatprep.mubr.msk.f32.mxu0 %vm103_vm0, %v3583_v31 }
  0x52   :  { %2597 = vmatprep.mubr.msk.f32.mxu1 %vm103_vm0, %v3583_v31 }
  0x54   :  { %2566 = vmatmul.mubr.msk.f32.gmra.mrb[10].mxu0 %vm103_vm0, %v3596_v32 }
  0x55   :  { %2598 = vmatmul.mubr.msk.f32.gmra.mrb[10].mxu1 %vm103_vm0, %v3596_v32  ;;  %2568 = vmatprep.mubr.msk.f32.mxu0 %vm103_vm0, %v3601_v33 }
  0x56   :  { %2600 = vmatprep.mubr.msk.f32.mxu1 %vm103_vm0, %v3601_v33 }
  0x58   :  { %2569 = vmatmul.mubr.msk.f32.gmra.mrb[12].mxu0 %vm103_vm0, %v3614_v34 }
  0x59   :  { %2601 = vmatmul.mubr.msk.f32.gmra.mrb[12].mxu1 %vm103_vm0, %v3614_v34  ;;  %2571 = vmatprep.mubr.msk.f32.mxu0 %vm103_vm0, %v3619_v35 }
  0x5a   :  { %2603 = vmatprep.mubr.msk.f32.mxu1 %vm103_vm0, %v3619_v35 }
  0x5c   :  { %2572 = vmatmul.mubr.msk.f32.gmra.mrb[14].mxu0 %vm103_vm0, %v3632_v36 }
  0x5d   :  { %2604 = vmatmul.mubr.msk.f32.gmra.mrb[14].mxu1 %vm103_vm0, %v3632_v36 }
  0x5e   :  { %2670 = vmatprep.mubr.msk.f32.mxu1 %vm103_vm0, %v3497_v11 }
  0x61   :  { %2671 = vmatmul.mubr.msk.f32.vlgmr.msra.gmra.mrb[16].mxu1 %vm103_vm0, %v3506_v15 }
  0x62   :  { %2673 = vmatprep.mubr.msk.f32.mxu1 %vm103_vm0, %v3511_v19  ;;  %3033 = vmatpush3.bf16.msra.mxu1 %v3030_v25 }
  0x63   :  { %3035 = vmatprep.subr.bf16.mxu1 %v3034_v39 }
  0x65   :  { %2674 = vmatmul.mubr.msk.f32.gmra.mrb[18].mxu1 %vm103_vm0, %v3524_v23 }
  0x66   :  { %2676 = vmatprep.mubr.msk.f32.mxu1 %vm103_vm0, %v3529_v24  ;;  %3037 = vmatpush3.bf16.msra.mxu1 %v3034_v39 }
  0x67   :  { %3087 = vmatprep.subr.bf16.mxu1 %v3086_v42 }
  0x69   :  { %2677 = vmatmul.mubr.msk.f32.gmra.mrb[20].mxu1 %vm103_vm0, %v3542_v26 }
  0x6a   :  { %2679 = vmatprep.mubr.msk.f32.mxu1 %vm103_vm0, %v3547_v27 }
  0x6d   :  { %2680 = vmatmul.mubr.msk.f32.gmra.mrb[22].mxu1 %vm103_vm0, %v3560_v28 }
  0x6e   :  { %2682 = vmatprep.mubr.msk.f32.mxu1 %vm103_vm0, %v3565_v29 }
  0x71   :  { %2683 = vmatmul.mubr.msk.f32.gmra.mrb[24].mxu1 %vm103_vm0, %v3578_v30 }
  0x72   :  { %2685 = vmatprep.mubr.msk.f32.mxu1 %vm103_vm0, %v3583_v31 }
  0x75   :  { %2686 = vmatmul.mubr.msk.f32.gmra.mrb[26].mxu1 %vm103_vm0, %v3596_v32 }
  0x76   :  { %2688 = vmatprep.mubr.msk.f32.mxu1 %vm103_vm0, %v3601_v33 }
  0x79   :  { %2689 = vmatmul.mubr.msk.f32.gmra.mrb[28].mxu1 %vm103_vm0, %v3614_v34 }
  0x7a   :  { %2691 = vmatprep.mubr.msk.f32.mxu1 %vm103_vm0, %v3619_v35 }
  0x7d   :  { %2692 = vmatmul.mubr.msk.f32.gmra.mrb[30].mxu1 %vm103_vm0, %v3632_v36 }
  0x7e   :  { %2702 = vmatprep.mubr.msk.f32.mxu1 %vm103_vm0, %v3497_v11 }
  0x81   :  { %2703 = vmatmul.mubr.msk.f32.vlgmr.msra.gmra.mrb[32].mxu1 %vm103_vm0, %v3506_v15 }
  0x82   :  { %2705 = vmatprep.mubr.msk.f32.mxu1 %vm103_vm0, %v3511_v19  ;;  %3089 = vmatpush3.bf16.msra.mxu1 %v3086_v42 }
  0x83   :  { %3091 = vmatprep.subr.bf16.mxu1 %v3090_v45 }
  0x85   :  { %2706 = vmatmul.mubr.msk.f32.gmra.mrb[34].mxu1 %vm103_vm0, %v3524_v23 }
  0x86   :  { %2708 = vmatprep.mubr.msk.f32.mxu1 %vm103_vm0, %v3529_v24  ;;  %3093 = vmatpush3.bf16.msra.mxu1 %v3090_v45 }
  0x89   :  { %2709 = vmatmul.mubr.msk.f32.gmra.mrb[36].mxu1 %vm103_vm0, %v3542_v26 }
  0x8a   :  { %2711 = vmatprep.mubr.msk.f32.mxu1 %vm103_vm0, %v3547_v27 }
  0x8d   :  { %2712 = vmatmul.mubr.msk.f32.gmra.mrb[38].mxu1 %vm103_vm0, %v3560_v28 }
  0x8e   :  { %2714 = vmatprep.mubr.msk.f32.mxu1 %vm103_vm0, %v3565_v29 }
  0x91   :  { %2715 = vmatmul.mubr.msk.f32.gmra.mrb[40].mxu1 %vm103_vm0, %v3578_v30 }
  0x92   :  { %2717 = vmatprep.mubr.msk.f32.mxu1 %vm103_vm0, %v3583_v31 }
  0x95   :  { %2718 = vmatmul.mubr.msk.f32.gmra.mrb[42].mxu1 %vm103_vm0, %v3596_v32 }
  0x96   :  { %2720 = vmatprep.mubr.msk.f32.mxu1 %vm103_vm0, %v3601_v33 }
  0x99   :  { %2721 = vmatmul.mubr.msk.f32.gmra.mrb[44].mxu1 %vm103_vm0, %v3614_v34 }
  0x9a   :  { %2723 = vmatprep.mubr.msk.f32.mxu1 %vm103_vm0, %v3619_v35 }
  0x9d   :  { %2724 = vmatmul.mubr.msk.f32.gmra.mrb[46].mxu1 %vm103_vm0, %v3632_v36 }
  0x9e   :  { %2790 = vmatprep.mubr.msk.f32.mxu1 %vm103_vm0, %v3497_v11 }
  0xa1   :  { %2791 = vmatmul.mubr.msk.f32.vlgmr.msra.gmra.mrb[48].mxu1 %vm103_vm0, %v3506_v15 }
  0xa2   :  { %2793 = vmatprep.mubr.msk.f32.mxu1 %vm103_vm0, %v3511_v19 }
  0xa5   :  { %2794 = vmatmul.mubr.msk.f32.gmra.mrb[50].mxu1 %vm103_vm0, %v3524_v23 }
  0xa6   :  { %2796 = vmatprep.mubr.msk.f32.mxu1 %vm103_vm0, %v3529_v24 }
  0xa9   :  { %2797 = vmatmul.mubr.msk.f32.gmra.mrb[52].mxu1 %vm103_vm0, %v3542_v26 }
  0xaa   :  { %2799 = vmatprep.mubr.msk.f32.mxu1 %vm103_vm0, %v3547_v27 }
  0xad   :  { %2800 = vmatmul.mubr.msk.f32.gmra.mrb[54].mxu1 %vm103_vm0, %v3560_v28 }
  0xae   :  { %2802 = vmatprep.mubr.msk.f32.mxu1 %vm103_vm0, %v3565_v29 }
  0xb1   :  { %2803 = vmatmul.mubr.msk.f32.gmra.mrb[56].mxu1 %vm103_vm0, %v3578_v30 }
  0xb2   :  { %2805 = vmatprep.mubr.msk.f32.mxu1 %vm103_vm0, %v3583_v31 }
  0xb5   :  { %2806 = vmatmul.mubr.msk.f32.gmra.mrb[58].mxu1 %vm103_vm0, %v3596_v32 }
  0xb6   :  { %2808 = vmatprep.mubr.msk.f32.mxu1 %vm103_vm0, %v3601_v33 }
  0xb9   :  { %2809 = vmatmul.mubr.msk.f32.gmra.mrb[60].mxu1 %vm103_vm0, %v3614_v34 }
  0xba   :  { %2811 = vmatprep.mubr.msk.f32.mxu1 %vm103_vm0, %v3619_v35 }
  0xbd   :  { %2812 = vmatmul.mubr.msk.f32.gmra.mrb[62].mxu1 %vm103_vm0, %v3632_v36 }
 0x113   :  { %v2552_v46 = vpop.f32.mrb[0].mxu0 }
 0x114   :  { %v218_v47 = vpop.f32.mrb[1].mxu0  ;;  %v3740_v49 = vpop.f32.mrb[0].mxu1 }
 0x115   :  { %v3742_v50 = vpack.c.bf16 %v2552_v46, %v218_v47  ;;  %v367_v51 = vpop.f32.mrb[1].mxu1 }
 0x116   :  { %2638 = vmatprep.mubr.msk.f32.mxu0 %vm103_vm0, %v367_v51 }
 0x117   :  { %2976 = vmatprep.subr.msk.bf16.mxu0 %vm3736_vm1, %v3742_v50  ;;  %v2555_v52 = vpop.f32.mrb[2].mxu0 }
 0x118   :  { %2979 = vmatpush3.bf16.xpose.msk.msra.mxu0 %vm3736_vm1, %v3742_v50  ;;  %v228_v53 = vpop.f32.mrb[3].mxu0  ;;  %v3751_v54 = vpop.f32.mrb[2].mxu1 }
 0x119   :  { %v3753_v55 = vpack.c.bf16 %v2555_v52, %v228_v53  ;;  %v3755_v56 = vpop.f32.mrb[3].mxu1 }
 0x11b   :  { %2982 = vmatprep.subr.msk.bf16.mxu0 %vm3736_vm1, %v3753_v55  ;;  %v2558_v57 = vpop.f32.mrb[4].mxu0 }
 0x11c   :  { %v238_v58 = vpop.f32.mrb[5].mxu0  ;;  %v3760_v59 = vpop.f32.mrb[4].mxu1 }
 0x11d   :  { %v3762_v60 = vpack.c.bf16 %v2558_v57, %v238_v58  ;;  %v3764_v61 = vpop.f32.mrb[5].mxu1 }
 0x11f   :  { %v2561_v62 = vpop.f32.mrb[6].mxu0 }
 0x120   :  { %2985 = vmatpush3.bf16.xpose.msk.msra.mxu0 %vm3736_vm1, %v3753_v55  ;;  %v248_v63 = vpop.f32.mrb[7].mxu0  ;;  %v3769_v0 = vpop.f32.mrb[6].mxu1 }
 0x121   :  { %2988 = vmatprep.subr.msk.bf16.mxu0 %vm3736_vm1, %v3762_v60  ;;  %v3774_v1 = vpack.c.bf16 %v2561_v62, %v248_v63  ;;  %v3776_v2 = vpop.f32.mrb[7].mxu1 }
 0x123   :  { %v2564_v3 = vpop.f32.mrb[8].mxu0 }
 0x124   :  { %v258_v4 = vpop.f32.mrb[9].mxu0  ;;  %v3778_v5 = vpop.f32.mrb[8].mxu1 }
 0x125   :  { %v3780_v6 = vpack.c.bf16 %v2564_v3, %v258_v4  ;;  %v3782_v7 = vpop.f32.mrb[9].mxu1 }
 0x127   :  { %v2567_v8 = vpop.f32.mrb[10].mxu0 }
 0x128   :  { %2991 = vmatpush3.bf16.xpose.msk.msra.mxu0 %vm3736_vm1, %v3762_v60  ;;  %v268_v9 = vpop.f32.mrb[11].mxu0  ;;  %v3787_v10 = vpop.f32.mrb[10].mxu1 }
 0x129   :  { %2994 = vmatprep.subr.msk.bf16.mxu0 %vm3736_vm1, %v3774_v1  ;;  %v3792_v11 = vpack.c.bf16 %v2567_v8, %v268_v9  ;;  %v3794_v12 = vpop.f32.mrb[11].mxu1 }
 0x12b   :  { %v2570_v13 = vpop.f32.mrb[12].mxu0 }
 0x12c   :  { %v278_v14 = vpop.f32.mrb[13].mxu0  ;;  %v3796_v15 = vpop.f32.mrb[12].mxu1 }
 0x12d   :  { %v3798_v16 = vpack.c.bf16 %v2570_v13, %v278_v14  ;;  %v3800_v17 = vpop.f32.mrb[13].mxu1 }
 0x12f   :  { %v2573_v18 = vpop.f32.mrb[14].mxu0 }
 0x130   :  { %2997 = vmatpush3.bf16.xpose.msk.msra.mxu0 %vm3736_vm1, %v3774_v1  ;;  %v288_v19 = vpop.f32.mrb[15].mxu0  ;;  %v3805_v20 = vpop.f32.mrb[14].mxu1 }
 0x131   :  { %3000 = vmatprep.subr.msk.bf16.mxu0 %vm3736_vm1, %v3780_v6  ;;  %v3810_v21 = vpack.c.bf16 %v2573_v18, %v288_v19  ;;  %v3812_v22 = vpop.f32.mrb[15].mxu1 }
 0x134   :  { %v2672_v23 = vpop.f32.mrb[16].mxu1 }
 0x135   :  { %v901_v24 = vpop.f32.mrb[17].mxu1 }
 0x136   :  { %v3814_v25 = vpack.c.bf16 %v2672_v23, %v901_v24 }
 0x138   :  { %3003 = vmatpush3.bf16.xpose.msk.msra.mxu0 %vm3736_vm1, %v3780_v6  ;;  %v2675_v26 = vpop.f32.mrb[18].mxu1 }
 0x139   :  { %3006 = vmatprep.subr.msk.bf16.mxu0 %vm3736_vm1, %v3792_v11  ;;  %v911_v27 = vpop.f32.mrb[19].mxu1 }
 0x13a   :  { %v3822_v28 = vpack.c.bf16 %v2675_v26, %v911_v27 }
 0x13c   :  { %v2678_v29 = vpop.f32.mrb[20].mxu1 }
 0x13d   :  { %v921_v30 = vpop.f32.mrb[21].mxu1 }
 0x13e   :  { %v3824_v31 = vpack.c.bf16 %v2678_v29, %v921_v30 }
 0x140   :  { %3009 = vmatpush3.bf16.xpose.msk.msra.mxu0 %vm3736_vm1, %v3792_v11  ;;  %v2681_v32 = vpop.f32.mrb[22].mxu1 }
 0x141   :  { %3012 = vmatprep.subr.msk.bf16.mxu0 %vm3736_vm1, %v3798_v16  ;;  %v931_v33 = vpop.f32.mrb[23].mxu1 }
 0x142   :  { %v3832_v34 = vpack.c.bf16 %v2681_v32, %v931_v33 }
 0x144   :  { %v2684_v35 = vpop.f32.mrb[24].mxu1 }
 0x145   :  { %v941_v36 = vpop.f32.mrb[25].mxu1 }
 0x146   :  { %v3834_v37 = vpack.c.bf16 %v2684_v35, %v941_v36 }
 0x148   :  { %3015 = vmatpush3.bf16.xpose.msk.msra.mxu0 %vm3736_vm1, %v3798_v16  ;;  %v2687_v38 = vpop.f32.mrb[26].mxu1 }
 0x149   :  { %3018 = vmatprep.subr.msk.bf16.mxu0 %vm3736_vm1, %v3810_v21  ;;  %v951_v39 = vpop.f32.mrb[27].mxu1 }
 0x14a   :  { %v3842_v40 = vpack.c.bf16 %v2687_v38, %v951_v39 }
 0x14c   :  { %v2690_v41 = vpop.f32.mrb[28].mxu1 }
 0x14d   :  { %v961_v42 = vpop.f32.mrb[29].mxu1 }
 0x14e   :  { %v3844_v43 = vpack.c.bf16 %v2690_v41, %v961_v42 }
 0x150   :  { %3021 = vmatpush3.bf16.xpose.msk.msra.mxu0 %vm3736_vm1, %v3810_v21  ;;  %v2693_v44 = vpop.f32.mrb[30].mxu1 }
 0x151   :  { %3040 = vmatprep.subr.msk.bf16.mxu0 %vm3736_vm1, %v3742_v50  ;;  %v971_v45 = vpop.f32.mrb[31].mxu1 }
 0x152   :  { %v3852_v46 = vpack.c.bf16 %v2693_v44, %v971_v45 }
 0x154   :  { %v3854_v47 = vpop.f32.mrb[32].mxu1 }
 0x155   :  { %v1051_v51 = vpop.f32.mrb[33].mxu1 }
 0x157   :  { %2639 = vmatmul.mubr.msk.f32.vlgmr.msra.gmra.mrb[16].mxu0 %vm103_vm0, %v3740_v49 }
 0x158   :  { %3043 = vmatpush3.bf16.xpose.msk.msra.mxu0 %vm3736_vm1, %v3742_v50  ;;  %2641 = vmatprep.mubr.msk.f32.mxu0 %vm103_vm0, %v3755_v56  ;;  %v3863_v52 = vpop.f32.mrb[34].mxu1 }
 0x159   :  { %3046 = vmatprep.subr.msk.bf16.mxu0 %vm3736_vm1, %v3753_v55  ;;  %v3868_v53 = vpop.f32.mrb[35].mxu1 }
 0x15b   :  { %2642 = vmatmul.mubr.msk.f32.gmra.mrb[18].mxu0 %vm103_vm0, %v3751_v54 }
 0x15c   :  { %2644 = vmatprep.mubr.msk.f32.mxu0 %vm103_vm0, %v3764_v61  ;;  %v3874_v49 = vpop.f32.mrb[36].mxu1 }
 0x15d   :  { %v3876_v50 = vpop.f32.mrb[37].mxu1 }
 0x15f   :  { %2645 = vmatmul.mubr.msk.f32.gmra.mrb[20].mxu0 %vm103_vm0, %v3760_v59 }
 0x160   :  { %3049 = vmatpush3.bf16.xpose.msk.msra.mxu0 %vm3736_vm1, %v3753_v55  ;;  %2647 = vmatprep.mubr.msk.f32.mxu0 %vm103_vm0, %v3776_v2  ;;  %v3885_v56 = vpop.f32.mrb[38].mxu1 }
 0x161   :  { %3052 = vmatprep.subr.msk.bf16.mxu0 %vm3736_vm1, %v3762_v60  ;;  %v3890_v54 = vpop.f32.mrb[39].mxu1 }
 0x163   :  { %2648 = vmatmul.mubr.msk.f32.gmra.mrb[22].mxu0 %vm103_vm0, %v3769_v0 }
 0x164   :  { %2650 = vmatprep.mubr.msk.f32.mxu0 %vm103_vm0, %v3782_v7  ;;  %v3896_v57 = vpop.f32.mrb[40].mxu1 }
 0x165   :  { %v3898_v55 = vpop.f32.mrb[41].mxu1 }
 0x167   :  { %2651 = vmatmul.mubr.msk.f32.gmra.mrb[24].mxu0 %vm103_vm0, %v3778_v5 }
 0x168   :  { %3055 = vmatpush3.bf16.xpose.msk.msra.mxu0 %vm3736_vm1, %v3762_v60  ;;  %2653 = vmatprep.mubr.msk.f32.mxu0 %vm103_vm0, %v3794_v12  ;;  %v3907_v58 = vpop.f32.mrb[42].mxu1 }
 0x169   :  { %3058 = vmatprep.subr.msk.bf16.mxu0 %vm3736_vm1, %v3774_v1  ;;  %v3912_v59 = vpop.f32.mrb[43].mxu1 }
 0x16b   :  { %2654 = vmatmul.mubr.msk.f32.gmra.mrb[26].mxu0 %vm103_vm0, %v3787_v10 }
 0x16c   :  { %2656 = vmatprep.mubr.msk.f32.mxu0 %vm103_vm0, %v3800_v17  ;;  %v3918_v61 = vpop.f32.mrb[44].mxu1 }
 0x16d   :  { %v3920_v60 = vpop.f32.mrb[45].mxu1 }
 0x16f   :  { %2657 = vmatmul.mubr.msk.f32.gmra.mrb[28].mxu0 %vm103_vm0, %v3796_v15 }
 0x170   :  { %3061 = vmatpush3.bf16.xpose.msk.msra.mxu0 %vm3736_vm1, %v3774_v1  ;;  %2659 = vmatprep.mubr.msk.f32.mxu0 %vm103_vm0, %v3812_v22  ;;  %v3929_v62 = vpop.f32.mrb[46].mxu1 }
 0x171   :  { %3064 = vmatprep.subr.msk.bf16.mxu0 %vm3736_vm1, %v3780_v6  ;;  %v3934_v63 = vpop.f32.mrb[47].mxu1 }
 0x173   :  { %2660 = vmatmul.mubr.msk.f32.gmra.mrb[30].mxu0 %vm103_vm0, %v3805_v20 }
 0x174   :  { %v2792_v0 = vpop.f32.mrb[48].mxu1  ;;  %2758 = vmatprep.mubr.msk.f32.mxu0 %vm103_vm0, %v1051_v51  ;;  %v83_v51 = vld [vmem:[%s4442_s1] sm:$0xff] }
 0x175   :  { %v1538_v2 = vpop.f32.mrb[49].mxu1 }
 0x176   :  { %v3094_v3 = vpack.c.bf16 %v2792_v0, %v1538_v2  ;;  %v88_v2 = vld [vmem:[%s4442_s1 + $0x28] sm:$0xff] }
 0x178   :  { %v2795_v1 = vpop.f32.mrb[50].mxu1  ;;  %3095 = vmatprep.subr.bf16.mxu1 %v3094_v3  ;;  %3067 = vmatpush3.bf16.xpose.msk.msra.mxu0 %vm3736_vm1, %v3780_v6 }
 0x179   :  { %v1548_v4 = vpop.f32.mrb[51].mxu1  ;;  %3097 = vmatpush3.bf16.msra.mxu1 %v3094_v3  ;;  %3070 = vmatprep.subr.msk.bf16.mxu0 %vm3736_vm1, %v3792_v11  ;;  %v89_v3 = vld [vmem:[%s4442_s1 + $0x30] sm:$0xff] }
 0x17a   :  { %v3098_v5 = vpack.c.bf16 %v2795_v1, %v1548_v4 }
 0x17c   :  { %v2798_v7 = vpop.f32.mrb[52].mxu1  ;;  %3099 = vmatprep.subr.bf16.mxu1 %v3098_v5 }
 0x17d   :  { %v1558_v8 = vpop.f32.mrb[53].mxu1  ;;  %3101 = vmatpush3.bf16.msra.mxu1 %v3098_v5 }
 0x17e   :  { %v3102_v9 = vpack.c.bf16 %v2798_v7, %v1558_v8  ;;  %v90_v8 = vld [vmem:[%s4442_s1 + $0x38] sm:$0xff] }
 0x180   :  { %v2801_v10 = vpop.f32.mrb[54].mxu1  ;;  %3103 = vmatprep.subr.bf16.mxu1 %v3102_v9  ;;  %3073 = vmatpush3.bf16.xpose.msk.msra.mxu0 %vm3736_vm1, %v3792_v11 }
 0x181   :  { %v1568_v12 = vpop.f32.mrb[55].mxu1  ;;  %3105 = vmatpush3.bf16.msra.mxu1 %v3102_v9  ;;  %3076 = vmatprep.subr.msk.bf16.mxu0 %vm3736_vm1, %v3798_v16  ;;  %v91_v9 = vld [vmem:[%s4442_s1 + $0x40] sm:$0xff] }
 0x182   :  { %v3106_v6 = vpack.c.bf16 %v2801_v10, %v1568_v12 }
 0x184   :  { %v2804_v13 = vpop.f32.mrb[56].mxu1  ;;  %3107 = vmatprep.subr.bf16.mxu1 %v3106_v6 }
 0x185   :  { %v1578_v14 = vpop.f32.mrb[57].mxu1  ;;  %3109 = vmatpush3.bf16.msra.mxu1 %v3106_v6 }
 0x186   :  { %v3110_v15 = vpack.c.bf16 %v2804_v13, %v1578_v14  ;;  %v92_v14 = vld [vmem:[%s4442_s1 + $0x48] sm:$0xff] }
 0x188   :  { %v2807_v17 = vpop.f32.mrb[58].mxu1  ;;  %3111 = vmatprep.subr.bf16.mxu1 %v3110_v15  ;;  %3079 = vmatpush3.bf16.xpose.msk.msra.mxu0 %vm3736_vm1, %v3798_v16 }
 0x189   :  { %v1588_v18 = vpop.f32.mrb[59].mxu1  ;;  %3113 = vmatpush3.bf16.msra.mxu1 %v3110_v15  ;;  %3082 = vmatprep.subr.msk.bf16.mxu0 %vm3736_vm1, %v3810_v21  ;;  %v93_v15 = vld [vmem:[%s4442_s1 + $0x50] sm:$0xff] }
 0x18a   :  { %v3114_v11 = vpack.c.bf16 %v2807_v17, %v1588_v18 }
 0x18c   :  { %v2810_v19 = vpop.f32.mrb[60].mxu1  ;;  %3115 = vmatprep.subr.bf16.mxu1 %v3114_v11 }
 0x18d   :  { %v1598_v20 = vpop.f32.mrb[61].mxu1  ;;  %3117 = vmatpush3.bf16.msra.mxu1 %v3114_v11 }
 0x18e   :  { %v3118_v22 = vpack.c.bf16 %v2810_v19, %v1598_v20  ;;  %v94_v20 = vld [vmem:[%s4442_s1 + $0x58] sm:$0xff] }
 0x190   :  { %v2813_v23 = vpop.f32.mrb[62].mxu1  ;;  %3119 = vmatprep.subr.bf16.mxu1 %v3118_v22  ;;  %3085 = vmatpush3.bf16.xpose.msk.msra.mxu0 %vm3736_vm1, %v3810_v21 }
 0x191   :  { %v1608_v24 = vpop.f32.mrb[63].mxu1  ;;  %3121 = vmatpush3.bf16.msra.mxu1 %v3118_v22  ;;  %v95_v22 = vld [vmem:[%s4442_s1 + $0x60] sm:$0xff] }
 0x192   :  { %v3122_v16 = vpack.c.bf16 %v2813_v23, %v1608_v24 }
 0x194   :  { %3123 = vmatprep.subr.bf16.mxu1 %v3122_v16 }
 0x195   :  { %3125 = vmatpush3.bf16.msra.mxu1 %v3122_v16 }
 0x196   :  { %3127 = vmatprep.subr.bf16.mxu1 %v3814_v25 }
 0x197   :  { %2759 = vmatmul.mubr.msk.f32.vlgmr.msra.gmra.mrb[32].mxu0 %vm103_vm0, %v3854_v47 }
 0x198   :  { %2761 = vmatprep.mubr.msk.f32.mxu0 %vm103_vm0, %v3868_v53 }
 0x19b   :  { %2762 = vmatmul.mubr.msk.f32.gmra.mrb[34].mxu0 %vm103_vm0, %v3863_v52 }
 0x19c   :  { %2764 = vmatprep.mubr.msk.f32.mxu0 %vm103_vm0, %v3876_v50  ;;  %v84_v50 = vld [vmem:[%s4442_s1 + $0x8] sm:$0xff] }
 0x19f   :  { %2765 = vmatmul.mubr.msk.f32.gmra.mrb[36].mxu0 %vm103_vm0, %v3874_v49 }
 0x1a0   :  { %2767 = vmatprep.mubr.msk.f32.mxu0 %vm103_vm0, %v3890_v54 }
 0x1a3   :  { %2768 = vmatmul.mubr.msk.f32.gmra.mrb[38].mxu0 %vm103_vm0, %v3885_v56  ;;  %v85_v56 = vld [vmem:[%s4442_s1 + $0x10] sm:$0xff] }
 0x1a4   :  { %2770 = vmatprep.mubr.msk.f32.mxu0 %vm103_vm0, %v3898_v55 }
 0x1a7   :  { %2771 = vmatmul.mubr.msk.f32.gmra.mrb[40].mxu0 %vm103_vm0, %v3896_v57 }
 0x1a8   :  { %2773 = vmatprep.mubr.msk.f32.mxu0 %vm103_vm0, %v3912_v59  ;;  %v86_v59 = vld [vmem:[%s4442_s1 + $0x18] sm:$0xff] }
 0x1ab   :  { %2774 = vmatmul.mubr.msk.f32.gmra.mrb[42].mxu0 %vm103_vm0, %v3907_v58 }
 0x1ac   :  { %2776 = vmatprep.mubr.msk.f32.mxu0 %vm103_vm0, %v3920_v60 }
 0x1af   :  { %2777 = vmatmul.mubr.msk.f32.gmra.mrb[44].mxu0 %vm103_vm0, %v3918_v61  ;;  %v87_v61 = vld [vmem:[%s4442_s1 + $0x20] sm:$0xff] }
 0x1b0   :  { %2779 = vmatprep.mubr.msk.f32.mxu0 %vm103_vm0, %v3934_v63 }
 0x1b3   :  { %2780 = vmatmul.mubr.msk.f32.gmra.mrb[46].mxu0 %vm103_vm0, %v3929_v62 }
 0x22a   :  { %v3991_v48 = vpop.f32.mrb[16].mxu0 }
 0x22b   :  { %v3993_v21 = vpop.f32.mrb[17].mxu0 }
 0x22e   :  { %v3995_v26 = vpop.f32.mrb[18].mxu0 }
 0x22f   :  { %v3997_v27 = vpop.f32.mrb[19].mxu0 }
 0x232   :  { %v3999_v29 = vpop.f32.mrb[20].mxu0 }
 0x233   :  { %v4001_v30 = vpop.f32.mrb[21].mxu0 }
 0x236   :  { %v4003_v32 = vpop.f32.mrb[22].mxu0 }
 0x237   :  { %v4005_v33 = vpop.f32.mrb[23].mxu0 }
 0x23a   :  { %v4007_v35 = vpop.f32.mrb[24].mxu0 }
 0x23b   :  { %v4009_v36 = vpop.f32.mrb[25].mxu0 }
 0x23e   :  { %v4011_v38 = vpop.f32.mrb[26].mxu0 }
 0x23f   :  { %v4013_v39 = vpop.f32.mrb[27].mxu0 }
 0x242   :  { %v4015_v41 = vpop.f32.mrb[28].mxu0 }
 0x243   :  { %v4017_v42 = vpop.f32.mrb[29].mxu0 }
 0x246   :  { %v4019_v44 = vpop.f32.mrb[30].mxu0 }
 0x247   :  { %v4021_v45 = vpop.f32.mrb[31].mxu0 }
 0x26a   :  { %v2760_v47 = vpop.f32.mrb[32].mxu0 }
 0x26b   :  { %v1244_v52 = vpop.f32.mrb[33].mxu0  ;;  %v4035_v57 = vadd.f32 %v2760_v47, %v84_v50 }
 0x26c   :  { %v4026_v53 = vadd.f32 %v1244_v52, %v83_v51  ;;  %v96_v52 = vld [vmem:[%s4442_s1 + $0x68] sm:$0xff] }
 0x26e   :  { %v2763_v49 = vpop.f32.mrb[34].mxu0  ;;  %1323 = vmax.xlane.f32.xlu0 %v4026_v53 }
 0x26f   :  { %v1254_v54 = vpop.f32.mrb[35].mxu0  ;;  %v4047_v62 = vadd.f32 %v2763_v49, %v86_v59  ;;  %v97_v49 = vld [vmem:[%s4442_s1 + $0x70] sm:$0xff] }
 0x270   :  { %v4037_v55 = vadd.f32 %v1254_v54, %v85_v56 }
 0x272   :  { %v2766_v58 = vpop.f32.mrb[36].mxu0  ;;  %1327 = vmax.xlane.f32.xlu1 %v4037_v55  ;;  %1325 = vmax.xlane.f32.xlu0 %v4035_v57 }
 0x273   :  { %v1264_v60 = vpop.f32.mrb[37].mxu0  ;;  %v4059_v4 = vadd.f32 %v2766_v58, %v88_v2 }
 0x274   :  { %v4049_v63 = vadd.f32 %v1264_v60, %v87_v61 }
 0x276   :  { %v2769_v0 = vpop.f32.mrb[38].mxu0  ;;  %1329 = vmax.xlane.f32.xlu1 %v4047_v62  ;;  %1331 = vmax.xlane.f32.xlu0 %v4049_v63 }
 0x277   :  { %v1274_v1 = vpop.f32.mrb[39].mxu0  ;;  %v4071_v12 = vadd.f32 %v2769_v0, %v90_v8  ;;  %v98_v0 = vld [vmem:[%s4442_s1 + $0x78] sm:$0xff] }
 0x278   :  { %v4061_v5 = vadd.f32 %v1274_v1, %v89_v3  ;;  %v4117_v1 = vadd.f32 %v3993_v21, %v83_v51  ;;  %v4135_v21 = vadd.f32 %v4001_v30, %v87_v61  ;;  %v4151_v30 = vadd.f32 %v4009_v36, %v91_v9 }
 0x279   :  { %v4167_v36 = vadd.f32 %v4017_v42, %v95_v22 }
 0x27a   :  { %v2772_v7 = vpop.f32.mrb[40].mxu0  ;;  %1333 = vmax.xlane.f32.xlu1 %v4059_v4  ;;  %1335 = vmax.xlane.f32.xlu0 %v4061_v5 }
 0x27b   :  { %v1284_v10 = vpop.f32.mrb[41].mxu0  ;;  %v4083_v18 = vadd.f32 %v2772_v7, %v92_v14 }
 0x27c   :  { %v4073_v6 = vadd.f32 %v1284_v10, %v91_v9  ;;  %v4124_v10 = vadd.f32 %v3991_v48, %v84_v50  ;;  %v4140_v48 = vadd.f32 %v3999_v29, %v88_v2  ;;  %v4156_v29 = vadd.f32 %v4007_v35, %v92_v14 }
 0x27d   :  { %v4172_v35 = vadd.f32 %v4015_v41, %v96_v52 }
 0x27e   :  { %v2775_v13 = vpop.f32.mrb[42].mxu0  ;;  %1337 = vmax.xlane.f32.xlu1 %v4071_v12  ;;  %1339 = vmax.xlane.f32.xlu0 %v4073_v6 }
 0x27f   :  { %v1294_v17 = vpop.f32.mrb[43].mxu0  ;;  %v4095_v24 = vadd.f32 %v2775_v13, %v94_v20  ;;  %v4127_v13 = vadd.f32 %v3997_v27, %v85_v56  ;;  %v4143_v27 = vadd.f32 %v4005_v33, %v89_v3  ;;  %v4159_v33 = vadd.f32 %v4013_v39, %v93_v15 }
 0x280   :  { %v4085_v11 = vadd.f32 %v1294_v17, %v93_v15  ;;  %v4132_v17 = vadd.f32 %v3995_v26, %v86_v59  ;;  %v4148_v26 = vadd.f32 %v4003_v32, %v90_v8  ;;  %v4164_v32 = vadd.f32 %v4011_v38, %v94_v20 }
 0x281   :  { %v4175_v39 = vadd.f32 %v4021_v45, %v97_v49  ;;  %v4180_v38 = vadd.f32 %v4019_v44, %v98_v0 }
 0x282   :  { %v2778_v19 = vpop.f32.mrb[44].mxu0  ;;  %1341 = vmax.xlane.f32.xlu1 %v4083_v18  ;;  %1343 = vmax.xlane.f32.xlu0 %v4085_v11 }
 0x283   :  { %v1304_v23 = vpop.f32.mrb[45].mxu0  ;;  %v4107_v58 = vadd.f32 %v2778_v19, %v96_v52 }
 0x284   :  { %v4097_v16 = vadd.f32 %v1304_v23, %v95_v22 }
 0x286   :  { %v2781_v47 = vpop.f32.mrb[46].mxu0  ;;  %1345 = vmax.xlane.f32.xlu1 %v4095_v24  ;;  %1347 = vmax.xlane.f32.xlu0 %v4097_v16 }
 0x287   :  { %v1314_v54 = vpop.f32.mrb[47].mxu0  ;;  %v4119_v7 = vadd.f32 %v2781_v47, %v98_v0 }
 0x288   :  { %v4109_v60 = vadd.f32 %v1314_v54, %v97_v49 }
 0x28a   :  { %1349 = vmax.xlane.f32.xlu1 %v4107_v58  ;;  %1351 = vmax.xlane.f32.xlu0 %v4109_v60 }
 0x28e   :  { %1353 = vmax.xlane.f32.xlu1 %v4119_v7  ;;  %687 = vmax.xlane.f32.xlu0 %v4117_v1 }
 0x292   :  { %689 = vmax.xlane.f32.xlu1 %v4124_v10  ;;  %691 = vmax.xlane.f32.xlu0 %v4127_v13 }
 0x296   :  { %693 = vmax.xlane.f32.xlu1 %v4132_v17  ;;  %695 = vmax.xlane.f32.xlu0 %v4135_v21 }
 0x29a   :  { %697 = vmax.xlane.f32.xlu1 %v4140_v48  ;;  %699 = vmax.xlane.f32.xlu0 %v4143_v27 }
 0x29e   :  { %701 = vmax.xlane.f32.xlu1 %v4148_v26  ;;  %703 = vmax.xlane.f32.xlu0 %v4151_v30 }
 0x2a2   :  { %705 = vmax.xlane.f32.xlu1 %v4156_v29  ;;  %707 = vmax.xlane.f32.xlu0 %v4159_v33 }
 0x2a6   :  { %709 = vmax.xlane.f32.xlu1 %v4164_v32  ;;  %711 = vmax.xlane.f32.xlu0 %v4167_v36 }
 0x2aa   :  { %713 = vmax.xlane.f32.xlu1 %v4172_v35  ;;  %715 = vmax.xlane.f32.xlu0 %v4175_v39 }
 0x2ae   :  { %717 = vmax.xlane.f32.xlu1 %v4180_v38 }
 0x2fb   :  { %v1324_v42 = vpop.xlane.xlu0 %1323 }
 0x2fc   :  { %v1355_v51 = vsub.f32 %v4026_v53, %v1324_v42 }
 0x2fe   :  { %v1371_v50 = vmul.f32 1.442695, %v1355_v51 }
 0x2ff   :  { %v1328_v56 = vpop.xlane.xlu1 %1327  ;;  %v1326_v59 = vpop.xlane.xlu0 %1325 }
 0x300   :  { %3187 = vpow2.f32 %v1371_v50  ;;  %v1357_v41 = vsub.f32 %v4037_v55, %v1328_v56  ;;  %v1356_v45 = vsub.f32 %v4035_v57, %v1326_v59 }
 0x302   :  { %v1375_v61 = vmul.f32 1.442695, %v1357_v41  ;;  %v1373_v2 = vmul.f32 1.442695, %v1356_v45 }
 0x303   :  { %v1330_v3 = vpop.xlane.xlu1 %1329  ;;  %v1332_v8 = vpop.xlane.xlu0 %1331 }
 0x304   :  { %3189 = vpow2.f32 %v1375_v61  ;;  %v1358_v44 = vsub.f32 %v4047_v62, %v1330_v3  ;;  %v1359_v9 = vsub.f32 %v4049_v63, %v1332_v8 }
 0x305   :  { %3191 = vpow2.f32 %v1373_v2 }
 0x306   :  { %v1377_v14 = vmul.f32 1.442695, %v1358_v44  ;;  %v1379_v53 = vmul.f32 1.442695, %v1359_v9 }
 0x307   :  { %v1334_v15 = vpop.xlane.xlu1 %1333  ;;  %v1336_v19 = vpop.xlane.xlu0 %1335 }
 0x308   :  { %3193 = vpow2.f32 %v1377_v14  ;;  %v1360_v20 = vsub.f32 %v4059_v4, %v1334_v15  ;;  %v1361_v55 = vsub.f32 %v4061_v5, %v1336_v19 }
 0x309   :  { %3195 = vpow2.f32 %v1379_v53 }
 0x30a   :  { %v4190_v57 = vpop.eup %3187  ;;  %v1381_v22 = vmul.f32 1.442695, %v1360_v20  ;;  %v1383_v23 = vmul.f32 1.442695, %v1361_v55 }
 0x30b   :  { %v1338_v47 = vpop.xlane.xlu1 %1337  ;;  %v1340_v52 = vpop.xlane.xlu0 %1339  ;;  %1403 = vadd.xlane.f32.xlu0 %v4190_v57 }
 0x30c   :  { %3197 = vpow2.f32 %v1381_v22  ;;  %v1362_v62 = vsub.f32 %v4071_v12, %v1338_v47  ;;  %v1363_v63 = vsub.f32 %v4073_v6, %v1340_v52 }
 0x30d   :  { %3199 = vpow2.f32 %v1383_v23 }
 0x30e   :  { %v4195_v49 = vpop.eup %3189  ;;  %v1385_v4 = vmul.f32 1.442695, %v1362_v62  ;;  %v1387_v54 = vmul.f32 1.442695, %v1363_v63 }
 0x30f   :  { %v4197_v5 = vpop.eup %3191  ;;  %v1342_v0 = vpop.xlane.xlu1 %1341  ;;  %1407 = vadd.xlane.f32.xlu0 %v4195_v49 }
 0x310   :  { %v1344_v42 = vpop.xlane.xlu0 %1343  ;;  %3201 = vpow2.f32 %v1385_v4  ;;  %v1364_v51 = vsub.f32 %v4083_v18, %v1342_v0  ;;  %1405 = vadd.xlane.f32.xlu1 %v4197_v5 }
 0x311   :  { %v1365_v12 = vsub.f32 %v4085_v11, %v1344_v42  ;;  %3203 = vpow2.f32 %v1387_v54 }
 0x312   :  { %v4203_v6 = vpop.eup %3193  ;;  %v1389_v50 = vmul.f32 1.442695, %v1364_v51 }
 0x313   :  { %v1391_v56 = vmul.f32 1.442695, %v1365_v12  ;;  %v4205_v59 = vpop.eup %3195  ;;  %v1346_v41 = vpop.xlane.xlu1 %1345 }
 0x314   :  { %v1348_v45 = vpop.xlane.xlu0 %1347  ;;  %3205 = vpow2.f32 %v1389_v50  ;;  %v1366_v61 = vsub.f32 %v4095_v24, %v1346_v41  ;;  %1409 = vadd.xlane.f32.xlu1 %v4203_v6  ;;  %1411 = vadd.xlane.f32.xlu0 %v4205_v59 }
 0x315   :  { %v1367_v18 = vsub.f32 %v4097_v16, %v1348_v45  ;;  %3207 = vpow2.f32 %v1391_v56 }
 0x316   :  { %v4211_v11 = vpop.eup %3197  ;;  %v1393_v2 = vmul.f32 1.442695, %v1366_v61 }
 0x317   :  { %v1395_v3 = vmul.f32 1.442695, %v1367_v18  ;;  %v4213_v8 = vpop.eup %3199  ;;  %v1350_v44 = vpop.xlane.xlu1 %1349 }
 0x318   :  { %v1352_v9 = vpop.xlane.xlu0 %1351  ;;  %3209 = vpow2.f32 %v1393_v2  ;;  %v1368_v14 = vsub.f32 %v4107_v58, %v1350_v44  ;;  %1413 = vadd.xlane.f32.xlu1 %v4211_v11  ;;  %1415 = vadd.xlane.f32.xlu0 %v4213_v8 }
 0x319   :  { %v1369_v24 = vsub.f32 %v4109_v60, %v1352_v9  ;;  %3211 = vpow2.f32 %v1395_v3 }
 0x31a   :  { %v4219_v16 = vpop.eup %3201  ;;  %v1397_v53 = vmul.f32 1.442695, %v1368_v14 }
 0x31b   :  { %v1399_v15 = vmul.f32 1.442695, %v1369_v24  ;;  %v4221_v19 = vpop.eup %3203  ;;  %v1354_v20 = vpop.xlane.xlu1 %1353 }
 0x31c   :  { %v688_v55 = vpop.xlane.xlu0 %687  ;;  %3213 = vpow2.f32 %v1397_v53  ;;  %v1370_v22 = vsub.f32 %v4119_v7, %v1354_v20  ;;  %1417 = vadd.xlane.f32.xlu1 %v4219_v16  ;;  %1419 = vadd.xlane.f32.xlu0 %v4221_v19 }
 0x31d   :  { %v719_v58 = vsub.f32 %v4117_v1, %v688_v55  ;;  %3215 = vpow2.f32 %v1399_v15 }
 0x31e   :  { %v4227_v60 = vpop.eup %3205  ;;  %v1401_v23 = vmul.f32 1.442695, %v1370_v22 }
 0x31f   :  { %v735_v47 = vmul.f32 1.442695, %v719_v58  ;;  %v4229_v52 = vpop.eup %3207  ;;  %v690_v62 = vpop.xlane.xlu1 %689 }
 0x320   :  { %v692_v63 = vpop.xlane.xlu0 %691  ;;  %3217 = vpow2.f32 %v1401_v23  ;;  %v720_v4 = vsub.f32 %v4124_v10, %v690_v62  ;;  %1421 = vadd.xlane.f32.xlu1 %v4227_v60  ;;  %1423 = vadd.xlane.f32.xlu0 %v4229_v52 }
 0x321   :  { %v721_v7 = vsub.f32 %v4127_v13, %v692_v63  ;;  %3219 = vpow2.f32 %v735_v47 }
 0x322   :  { %v4235_v1 = vpop.eup %3209  ;;  %v737_v54 = vmul.f32 1.442695, %v720_v4 }
 0x323   :  { %v739_v0 = vmul.f32 1.442695, %v721_v7  ;;  %v4237_v42 = vpop.eup %3211  ;;  %v694_v51 = vpop.xlane.xlu1 %693 }
 0x324   :  { %v696_v12 = vpop.xlane.xlu0 %695  ;;  %3221 = vpow2.f32 %v737_v54  ;;  %v722_v50 = vsub.f32 %v4132_v17, %v694_v51  ;;  %1425 = vadd.xlane.f32.xlu1 %v4235_v1  ;;  %1427 = vadd.xlane.f32.xlu0 %v4237_v42 }
 0x325   :  { %v723_v10 = vsub.f32 %v4135_v21, %v696_v12  ;;  %3223 = vpow2.f32 %v739_v0 }
 0x326   :  { %v4243_v13 = vpop.eup %3213  ;;  %v741_v56 = vmul.f32 1.442695, %v722_v50 }
 0x327   :  { %v743_v41 = vmul.f32 1.442695, %v723_v10  ;;  %v4245_v45 = vpop.eup %3215  ;;  %v698_v61 = vpop.xlane.xlu1 %697 }
 0x328   :  { %v700_v18 = vpop.xlane.xlu0 %699  ;;  %3225 = vpow2.f32 %v741_v56  ;;  %v724_v2 = vsub.f32 %v4140_v48, %v698_v61  ;;  %1429 = vadd.xlane.f32.xlu1 %v4243_v13  ;;  %1431 = vadd.xlane.f32.xlu0 %v4245_v45 }
 0x329   :  { %v725_v17 = vsub.f32 %v4143_v27, %v700_v18  ;;  %3227 = vpow2.f32 %v743_v41 }
 0x32a   :  { %v4251_v21 = vpop.eup %3217  ;;  %v745_v3 = vmul.f32 1.442695, %v724_v2 }
 0x32b   :  { %v747_v44 = vmul.f32 1.442695, %v725_v17  ;;  %v4253_v9 = vpop.eup %3219  ;;  %v702_v14 = vpop.xlane.xlu1 %701 }
 0x32c   :  { %v704_v24 = vpop.xlane.xlu0 %703  ;;  %3229 = vpow2.f32 %v745_v3  ;;  %v726_v53 = vsub.f32 %v4148_v26, %v702_v14  ;;  %1433 = vadd.xlane.f32.xlu1 %v4251_v21  ;;  %767 = vadd.xlane.f32.xlu0 %v4253_v9 }
 0x32d   :  { %v727_v48 = vsub.f32 %v4151_v30, %v704_v24  ;;  %3231 = vpow2.f32 %v747_v44 }
 0x32e   :  { %v4259_v27 = vpop.eup %3221  ;;  %v749_v15 = vmul.f32 1.442695, %v726_v53 }
 0x32f   :  { %v751_v20 = vmul.f32 1.442695, %v727_v48  ;;  %v4261_v55 = vpop.eup %3223  ;;  %v706_v22 = vpop.xlane.xlu1 %705  ;;  %v1907_v48 = vld [vmem:[#allocation6] sm:$0xff] }
 0x330   :  { %v708_v58 = vpop.xlane.xlu0 %707  ;;  %3233 = vpow2.f32 %v749_v15  ;;  %v728_v23 = vsub.f32 %v4156_v29, %v706_v22  ;;  %769 = vadd.xlane.f32.xlu1 %v4259_v27  ;;  %771 = vadd.xlane.f32.xlu0 %v4261_v55  ;;  %v1908_v15 = vld [vmem:[#allocation6 + $0x8] sm:$0xff] }
 0x331   :  { %v729_v26 = vsub.f32 %v4159_v33, %v708_v58  ;;  %3235 = vpow2.f32 %v751_v20  ;;  %v1909_v20 = vld [vmem:[#allocation6 + $0x10] sm:$0xff]  ;;  %v3158_v22 = vpack.c.bf16 %v1908_v15, %v1907_v48  ;;  %v1910_v58 = vld [vmem:[#allocation6 + $0x18] sm:$0xff] }
 0x332   :  { %v4267_v30 = vpop.eup %3225  ;;  %v753_v47 = vmul.f32 1.442695, %v728_v23  ;;  %v3162_v23 = vpack.c.bf16 %v1910_v58, %v1909_v20 }
 0x333   :  { %v755_v62 = vmul.f32 1.442695, %v729_v26  ;;  %v4269_v63 = vpop.eup %3227  ;;  %v710_v4 = vpop.xlane.xlu1 %709  ;;  %3159 = vmatprep.subr.bf16.mxu0 %v3158_v22 }
 0x334   :  { %v712_v7 = vpop.xlane.xlu0 %711  ;;  %3237 = vpow2.f32 %v753_v47  ;;  %v730_v54 = vsub.f32 %v4164_v32, %v710_v4  ;;  %773 = vadd.xlane.f32.xlu1 %v4267_v30  ;;  %775 = vadd.xlane.f32.xlu0 %v4269_v63 }
 0x335   :  { %v731_v29 = vsub.f32 %v4167_v36, %v712_v7  ;;  %3239 = vpow2.f32 %v755_v62  ;;  %3161 = vmatpush3.bf16.msra.mxu0 %v3158_v22 }
 0x336   :  { %v4275_v33 = vpop.eup %3229  ;;  %v757_v0 = vmul.f32 1.442695, %v730_v54  ;;  %3163 = vmatprep.subr.bf16.mxu0 %v3162_v23 }
 0x337   :  { %v759_v51 = vmul.f32 1.442695, %v731_v29  ;;  %v4277_v12 = vpop.eup %3231  ;;  %v714_v50 = vpop.xlane.xlu1 %713 }
 0x338   :  { %v716_v10 = vpop.xlane.xlu0 %715  ;;  %3241 = vpow2.f32 %v757_v0  ;;  %v732_v56 = vsub.f32 %v4172_v35, %v714_v50  ;;  %777 = vadd.xlane.f32.xlu1 %v4275_v33  ;;  %779 = vadd.xlane.f32.xlu0 %v4277_v12 }
 0x339   :  { %v733_v32 = vsub.f32 %v4175_v39, %v716_v10  ;;  %3243 = vpow2.f32 %v759_v51  ;;  %3165 = vmatpush3.bf16.msra.mxu0 %v3162_v23 }
 0x33a   :  { %v4283_v36 = vpop.eup %3233  ;;  %v761_v41 = vmul.f32 1.442695, %v732_v56 }
 0x33b   :  { %v763_v61 = vmul.f32 1.442695, %v733_v32  ;;  %v4285_v18 = vpop.eup %3235  ;;  %v718_v2 = vpop.xlane.xlu1 %717 }
 0x33c   :  { %3245 = vpow2.f32 %v761_v41  ;;  %v734_v17 = vsub.f32 %v4180_v38, %v718_v2  ;;  %781 = vadd.xlane.f32.xlu1 %v4283_v36  ;;  %783 = vadd.xlane.f32.xlu0 %v4285_v18 }
 0x33d   :  { %3247 = vpow2.f32 %v763_v61 }
 0x33e   :  { %v4290_v35 = vpop.eup %3237  ;;  %v765_v3 = vmul.f32 1.442695, %v734_v17 }
 0x33f   :  { %v4292_v39 = vpop.eup %3239 }
 0x340   :  { %3249 = vpow2.f32 %v765_v3  ;;  %785 = vadd.xlane.f32.xlu1 %v4290_v35  ;;  %787 = vadd.xlane.f32.xlu0 %v4292_v39 }
 0x342   :  { %v4296_v44 = vpop.eup %3241 }
 0x343   :  { %v4298_v14 = vpop.eup %3243 }
 0x344   :  { %789 = vadd.xlane.f32.xlu1 %v4296_v44  ;;  %791 = vadd.xlane.f32.xlu0 %v4298_v14 }
 0x346   :  { %v4302_v38 = vpop.eup %3245 }
 0x347   :  { %v4304_v24 = vpop.eup %3247 }
 0x348   :  { %793 = vadd.xlane.f32.xlu1 %v4302_v38  ;;  %795 = vadd.xlane.f32.xlu0 %v4304_v24 }
 0x34a   :  { %v4308_v53 = vpop.eup %3249 }
 0x34c   :  { %797 = vadd.xlane.f32.xlu1 %v4308_v53 }
 0x398   :  { %v1404_v26 = vpop.xlane.xlu0 %1403 }
 0x399   :  { %3251 = vrcp.f32 %v1404_v26 }
 0x39c   :  { %v1408_v47 = vpop.xlane.xlu0 %1407 }
 0x39d   :  { %v1406_v62 = vpop.xlane.xlu1 %1405  ;;  %3253 = vrcp.f32 %v1408_v47 }
 0x39e   :  { %3255 = vrcp.f32 %v1406_v62 }
 0x3a1   :  { %v1410_v4 = vpop.xlane.xlu1 %1409  ;;  %v1412_v7 = vpop.xlane.xlu0 %1411 }
 0x3a2   :  { %3257 = vrcp.f32 %v1410_v4 }
 0x3a3   :  { %v3252_v54 = vpop.eup %3251  ;;  %3259 = vrcp.f32 %v1412_v7 }
 0x3a4   :  { %v1451_v29 = vmul.f32 %v3252_v54, %v4190_v57 }
 0x3a5   :  { %v1414_v0 = vpop.xlane.xlu1 %1413  ;;  %v1416_v51 = vpop.xlane.xlu0 %1415 }
 0x3a6   :  { %3261 = vrcp.f32 %v1414_v0  ;;  %2846 = vmatprep.mubr.f32.mxu1 %v1451_v29 }
 0x3a7   :  { %v3254_v50 = vpop.eup %3253  ;;  %3263 = vrcp.f32 %v1416_v51 }
 0x3a8   :  { %v3256_v10 = vpop.eup %3255  ;;  %v1453_v56 = vmul.f32 %v3254_v50, %v4195_v49 }
 0x3a9   :  { %v1452_v32 = vmul.f32 %v3256_v10, %v4197_v5  ;;  %v1418_v41 = vpop.xlane.xlu1 %1417  ;;  %v1420_v61 = vpop.xlane.xlu0 %1419 }
 0x3aa   :  { %3265 = vrcp.f32 %v1418_v41 }
 0x3ab   :  { %3267 = vrcp.f32 %v1420_v61  ;;  %2847 = vmatmul.mubr.f32.vlgmr.msra.gmra.mrb[64].mxu1 %v1452_v32 }
 0x3ac   :  { %v3258_v2 = vpop.eup %3257  ;;  %3129 = vmatpush3.bf16.msra.mxu1 %v3814_v25  ;;  %2849 = vmatprep.mubr.f32.mxu1 %v1453_v56 }
 0x3ad   :  { %v3260_v57 = vpop.eup %3259  ;;  %3131 = vmatprep.subr.bf16.mxu1 %v3822_v28  ;;  %v1422_v17 = vpop.xlane.xlu1 %1421  ;;  %v1454_v48 = vmul.f32 %v3258_v2, %v4203_v6 }
 0x3ae   :  { %v1424_v3 = vpop.xlane.xlu0 %1423  ;;  %3269 = vrcp.f32 %v1422_v17  ;;  %v1455_v49 = vmul.f32 %v3260_v57, %v4205_v59 }
 0x3af   :  { %3271 = vrcp.f32 %v1424_v3  ;;  %2850 = vmatmul.mubr.f32.gmra.mrb[66].mxu1 %v1454_v48 }
 0x3b0   :  { %v3262_v5 = vpop.eup %3261  ;;  %3133 = vmatpush3.bf16.msra.mxu1 %v3822_v28  ;;  %2852 = vmatprep.mubr.f32.mxu1 %v1455_v49 }
 0x3b1   :  { %v3264_v15 = vpop.eup %3263  ;;  %3135 = vmatprep.subr.bf16.mxu1 %v3824_v31  ;;  %v1426_v25 = vpop.xlane.xlu1 %1425  ;;  %v1456_v22 = vmul.f32 %v3262_v5, %v4211_v11 }
 0x3b2   :  { %v1428_v20 = vpop.xlane.xlu0 %1427  ;;  %3273 = vrcp.f32 %v1426_v25  ;;  %v1457_v58 = vmul.f32 %v3264_v15, %v4213_v8 }
 0x3b3   :  { %3275 = vrcp.f32 %v1428_v20  ;;  %2853 = vmatmul.mubr.f32.gmra.mrb[68].mxu1 %v1456_v22 }
 0x3b4   :  { %v3266_v6 = vpop.eup %3265  ;;  %3137 = vmatpush3.bf16.msra.mxu1 %v3824_v31  ;;  %2855 = vmatprep.mubr.f32.mxu1 %v1457_v58 }
 0x3b5   :  { %v3268_v59 = vpop.eup %3267  ;;  %3139 = vmatprep.subr.bf16.mxu1 %v3832_v34  ;;  %v1430_v28 = vpop.xlane.xlu1 %1429  ;;  %v1458_v26 = vmul.f32 %v3266_v6, %v4219_v16 }
 0x3b6   :  { %v1432_v23 = vpop.xlane.xlu0 %1431  ;;  %3277 = vrcp.f32 %v1430_v28  ;;  %v1459_v47 = vmul.f32 %v3268_v59, %v4221_v19 }
 0x3b7   :  { %3279 = vrcp.f32 %v1432_v23  ;;  %2856 = vmatmul.mubr.f32.gmra.mrb[70].mxu1 %v1458_v26 }
 0x3b8   :  { %v3270_v11 = vpop.eup %3269  ;;  %3141 = vmatpush3.bf16.msra.mxu1 %v3832_v34  ;;  %2858 = vmatprep.mubr.f32.mxu1 %v1459_v47 }
 0x3b9   :  { %v3272_v8 = vpop.eup %3271  ;;  %3143 = vmatprep.subr.bf16.mxu1 %v3834_v37  ;;  %v1434_v31 = vpop.xlane.xlu1 %1433  ;;  %v1460_v4 = vmul.f32 %v3270_v11, %v4227_v60 }
 0x3ba   :  { %v768_v62 = vpop.xlane.xlu0 %767  ;;  %3281 = vrcp.f32 %v1434_v31  ;;  %v1461_v7 = vmul.f32 %v3272_v8, %v4229_v52 }
 0x3bb   :  { %3283 = vrcp.f32 %v768_v62  ;;  %2859 = vmatmul.mubr.f32.gmra.mrb[72].mxu1 %v1460_v4 }
 0x3bc   :  { %v3274_v16 = vpop.eup %3273  ;;  %3145 = vmatpush3.bf16.msra.mxu1 %v3834_v37  ;;  %2861 = vmatprep.mubr.f32.mxu1 %v1461_v7 }
 0x3bd   :  { %v3276_v19 = vpop.eup %3275  ;;  %3147 = vmatprep.subr.bf16.mxu1 %v3842_v40  ;;  %v770_v34 = vpop.xlane.xlu1 %769  ;;  %v1462_v29 = vmul.f32 %v3274_v16, %v4235_v1 }
 0x3be   :  { %v772_v54 = vpop.xlane.xlu0 %771  ;;  %3285 = vrcp.f32 %v770_v34  ;;  %v1463_v0 = vmul.f32 %v3276_v19, %v4237_v42 }
 0x3bf   :  { %3287 = vrcp.f32 %v772_v54  ;;  %2862 = vmatmul.mubr.f32.gmra.mrb[74].mxu1 %v1462_v29 }
 0x3c0   :  { %v3278_v60 = vpop.eup %3277  ;;  %3149 = vmatpush3.bf16.msra.mxu1 %v3842_v40  ;;  %2864 = vmatprep.mubr.f32.mxu1 %v1463_v0 }
 0x3c1   :  { %v3280_v52 = vpop.eup %3279  ;;  %3151 = vmatprep.subr.bf16.mxu1 %v3844_v43  ;;  %v774_v37 = vpop.xlane.xlu1 %773  ;;  %v1464_v50 = vmul.f32 %v3278_v60, %v4243_v13 }
 0x3c2   :  { %v776_v51 = vpop.xlane.xlu0 %775  ;;  %3289 = vrcp.f32 %v774_v37  ;;  %v1465_v10 = vmul.f32 %v3280_v52, %v4245_v45 }
 0x3c3   :  { %3291 = vrcp.f32 %v776_v51  ;;  %2865 = vmatmul.mubr.f32.gmra.mrb[76].mxu1 %v1464_v50  ;;  %v2277_v51 = vld [vmem:[%s4447_s6] ss:$0 sm:$0xff] }
 0x3c4   :  { %v3282_v1 = vpop.eup %3281  ;;  %3153 = vmatpush3.bf16.msra.mxu1 %v3844_v43  ;;  %2867 = vmatprep.mubr.f32.mxu1 %v1465_v10 }
 0x3c5   :  { %v3284_v42 = vpop.eup %3283  ;;  %3155 = vmatprep.subr.bf16.mxu1 %v3852_v46  ;;  %v778_v40 = vpop.xlane.xlu1 %777  ;;  %v1466_v32 = vmul.f32 %v3282_v1, %v4251_v21 }
 0x3c6   :  { %v780_v56 = vpop.xlane.xlu0 %779  ;;  %3293 = vrcp.f32 %v778_v40  ;;  %v815_v41 = vmul.f32 %v3284_v42, %v4253_v9 }
 0x3c7   :  { %3295 = vrcp.f32 %v780_v56  ;;  %2868 = vmatmul.mubr.f32.gmra.mrb[78].mxu1 %v1466_v32 }
 0x3c8   :  { %v3286_v13 = vpop.eup %3285  ;;  %3157 = vmatpush3.bf16.msra.mxu1 %v3852_v46  ;;  %2902 = vmatprep.mubr.f32.mxu1 %v815_v41 }
 0x3c9   :  { %v3288_v45 = vpop.eup %3287  ;;  %v816_v43 = vmul.f32 %v3286_v13, %v4259_v27  ;;  %v782_v61 = vpop.xlane.xlu1 %781 }
 0x3ca   :  { %v784_v2 = vpop.xlane.xlu0 %783  ;;  %3297 = vrcp.f32 %v782_v61  ;;  %v817_v57 = vmul.f32 %v3288_v45, %v4261_v55 }
 0x3cb   :  { %3299 = vrcp.f32 %v784_v2  ;;  %2903 = vmatmul.mubr.f32.vlgmr.msra.gmra.mrb[64].mxu1 %v816_v43 }
 0x3cc   :  { %v3290_v21 = vpop.eup %3289  ;;  %2905 = vmatprep.mubr.f32.mxu1 %v817_v57 }
 0x3cd   :  { %v3292_v17 = vpop.eup %3291  ;;  %v786_v9 = vpop.xlane.xlu1 %785  ;;  %v818_v48 = vmul.f32 %v3290_v21, %v4267_v30 }
 0x3ce   :  { %v788_v3 = vpop.xlane.xlu0 %787  ;;  %3301 = vrcp.f32 %v786_v9  ;;  %v819_v46 = vmul.f32 %v3292_v17, %v4269_v63 }
 0x3cf   :  { %3303 = vrcp.f32 %v788_v3  ;;  %2906 = vmatmul.mubr.f32.gmra.mrb[66].mxu1 %v818_v48 }
 0x3d0   :  { %v3294_v27 = vpop.eup %3293  ;;  %2908 = vmatprep.mubr.f32.mxu1 %v819_v46 }
 0x3d1   :  { %v3296_v49 = vpop.eup %3295  ;;  %v790_v5 = vpop.xlane.xlu1 %789  ;;  %v820_v55 = vmul.f32 %v3294_v27, %v4275_v33 }
 0x3d2   :  { %v792_v15 = vpop.xlane.xlu0 %791  ;;  %3305 = vrcp.f32 %v790_v5  ;;  %v821_v25 = vmul.f32 %v3296_v49, %v4277_v12 }
 0x3d3   :  { %3307 = vrcp.f32 %v792_v15  ;;  %2909 = vmatmul.mubr.f32.gmra.mrb[68].mxu1 %v820_v55 }
 0x3d4   :  { %v3298_v20 = vpop.eup %3297  ;;  %2911 = vmatprep.mubr.f32.mxu1 %v821_v25 }
 0x3d5   :  { %v3300_v30 = vpop.eup %3299  ;;  %v794_v22 = vpop.xlane.xlu1 %793  ;;  %v822_v63 = vmul.f32 %v3298_v20, %v4283_v36 }
 0x3d6   :  { %v796_v58 = vpop.xlane.xlu0 %795  ;;  %3309 = vrcp.f32 %v794_v22  ;;  %v823_v6 = vmul.f32 %v3300_v30, %v4285_v18 }
 0x3d7   :  { %3311 = vrcp.f32 %v796_v58  ;;  %2912 = vmatmul.mubr.f32.gmra.mrb[70].mxu1 %v822_v63 }
 0x3d8   :  { %v3302_v59 = vpop.eup %3301  ;;  %2914 = vmatprep.mubr.f32.mxu1 %v823_v6 }
 0x3d9   :  { %v3304_v33 = vpop.eup %3303  ;;  %v798_v28 = vpop.xlane.xlu1 %797  ;;  %v824_v12 = vmul.f32 %v3302_v59, %v4290_v35 }
 0x3da   :  { %3313 = vrcp.f32 %v798_v28  ;;  %v825_v23 = vmul.f32 %v3304_v33, %v4292_v39 }
 0x3db   :  { %2915 = vmatmul.mubr.f32.gmra.mrb[72].mxu1 %v824_v12 }
 0x3dc   :  { %v3306_v26 = vpop.eup %3305  ;;  %2917 = vmatprep.mubr.f32.mxu1 %v825_v23 }
 0x3dd   :  { %v3308_v47 = vpop.eup %3307  ;;  %v826_v36 = vmul.f32 %v3306_v26, %v4296_v44 }
 0x3de   :  { %v827_v11 = vmul.f32 %v3308_v47, %v4298_v14 }
 0x3df   :  { %2918 = vmatmul.mubr.f32.gmra.mrb[74].mxu1 %v826_v36 }
 0x3e0   :  { %v3310_v18 = vpop.eup %3309  ;;  %2920 = vmatprep.mubr.f32.mxu1 %v827_v11 }
 0x3e1   :  { %v3312_v8 = vpop.eup %3311  ;;  %v828_v31 = vmul.f32 %v3310_v18, %v4302_v38 }
 0x3e2   :  { %v829_v62 = vmul.f32 %v3312_v8, %v4304_v24 }
 0x3e3   :  { %2921 = vmatmul.mubr.f32.gmra.mrb[76].mxu1 %v828_v31 }
 0x3e4   :  { %v3314_v35 = vpop.eup %3313  ;;  %2923 = vmatprep.mubr.f32.mxu1 %v829_v62 }
 0x3e5   :  { %v830_v39 = vmul.f32 %v3314_v35, %v4308_v53 }
 0x3e7   :  { %2924 = vmatmul.mubr.f32.gmra.mrb[78].mxu1 %v830_v39 }
 0x49e   :  { %v2904_v4 = vpop.f32.mrb[64].mxu1 }
 0x49f   :  { %v1828_v7 = vpop.f32.mrb[65].mxu1 }
 0x4a0   :  { %2934 = vmatprep.mubr.msk.f32.mxu0 %vm103_vm0, %v1828_v7 }
 0x4a1   :  { %2935 = vmatmul.mubr.msk.f32.vlgmr.msra.gmra.mrb[48].mxu0 %vm103_vm0, %v2904_v4 }
 0x4a2   :  { %v2907_v44 = vpop.f32.mrb[66].mxu1 }
 0x4a3   :  { %v1838_v14 = vpop.f32.mrb[67].mxu1 }
 0x4a4   :  { %2937 = vmatprep.mubr.msk.f32.mxu0 %vm103_vm0, %v1838_v14 }
 0x4a5   :  { %2938 = vmatmul.mubr.msk.f32.gmra.mrb[50].mxu0 %vm103_vm0, %v2907_v44 }
 0x4a6   :  { %v2910_v38 = vpop.f32.mrb[68].mxu1 }
 0x4a7   :  { %v1848_v24 = vpop.f32.mrb[69].mxu1 }
 0x4a8   :  { %2940 = vmatprep.mubr.msk.f32.mxu0 %vm103_vm0, %v1848_v24 }
 0x4a9   :  { %2941 = vmatmul.mubr.msk.f32.gmra.mrb[52].mxu0 %vm103_vm0, %v2910_v38 }
 0x4aa   :  { %v2913_v53 = vpop.f32.mrb[70].mxu1 }
 0x4ab   :  { %v1858_v16 = vpop.f32.mrb[71].mxu1 }
 0x4ac   :  { %2943 = vmatprep.mubr.msk.f32.mxu0 %vm103_vm0, %v1858_v16 }
 0x4ad   :  { %2944 = vmatmul.mubr.msk.f32.gmra.mrb[54].mxu0 %vm103_vm0, %v2913_v53 }
 0x4ae   :  { %v2916_v19 = vpop.f32.mrb[72].mxu1 }
 0x4af   :  { %v1868_v34 = vpop.f32.mrb[73].mxu1 }
 0x4b0   :  { %2946 = vmatprep.mubr.msk.f32.mxu0 %vm103_vm0, %v1868_v34 }
 0x4b1   :  { %2947 = vmatmul.mubr.msk.f32.gmra.mrb[56].mxu0 %vm103_vm0, %v2916_v19 }
 0x4b2   :  { %v2919_v54 = vpop.f32.mrb[74].mxu1 }
 0x4b3   :  { %v1878_v29 = vpop.f32.mrb[75].mxu1 }
 0x4b4   :  { %2949 = vmatprep.mubr.msk.f32.mxu0 %vm103_vm0, %v1878_v29 }
 0x4b5   :  { %2950 = vmatmul.mubr.msk.f32.gmra.mrb[58].mxu0 %vm103_vm0, %v2919_v54 }
 0x4b6   :  { %v2922_v0 = vpop.f32.mrb[76].mxu1 }
 0x4b7   :  { %v1888_v60 = vpop.f32.mrb[77].mxu1 }
 0x4b8   :  { %2952 = vmatprep.mubr.msk.f32.mxu0 %vm103_vm0, %v1888_v60 }
 0x4b9   :  { %2953 = vmatmul.mubr.msk.f32.gmra.mrb[60].mxu0 %vm103_vm0, %v2922_v0 }
 0x4ba   :  { %v2925_v52 = vpop.f32.mrb[78].mxu1 }
 0x4bb   :  { %v1898_v37 = vpop.f32.mrb[79].mxu1 }
 0x4bc   :  { %2955 = vmatprep.mubr.msk.f32.mxu0 %vm103_vm0, %v1898_v37 }
 0x4bd   :  { %2956 = vmatmul.mubr.msk.f32.gmra.mrb[62].mxu0 %vm103_vm0, %v2925_v52 }
 0x574   :  { %v2936_v50 = vpop.f32.mrb[48].mxu0 }
 0x575   :  { %v2038_v10 = vadd.f32 %v2936_v50, %v2277_v51  ;;  %v2032_v1 = vpop.f32.mrb[49].mxu0 }
 0x576   :  { %v2033_v42 = vadd.f32 %v2277_v51, %v2032_v1 }
 0x577   :  { %2112 = vst.msk [vmem:[%s4448_s7 + $0x8] sm:$0xff] %vm103_vm0, %v2038_v10 }
 0x578   :  { %2111 = vst.msk [vmem:[%s4448_s7] sm:$0xff] %vm103_vm0, %v2033_v42  ;;  %v2939_v40 = vpop.f32.mrb[50].mxu0 }
 0x579   :  { %v2048_v56 = vadd.f32 %v2939_v40, %v2277_v51  ;;  %v2042_v32 = vpop.f32.mrb[51].mxu0 }
 0x57a   :  { %v2043_v41 = vadd.f32 %v2277_v51, %v2042_v32 }
 0x57b   :  { %2114 = vst.msk [vmem:[%s4448_s7 + $0x18] sm:$0xff] %vm103_vm0, %v2048_v56 }
 0x57c   :  { %2113 = vst.msk [vmem:[%s4448_s7 + $0x10] sm:$0xff] %vm103_vm0, %v2043_v41  ;;  %v2942_v13 = vpop.f32.mrb[52].mxu0 }
 0x57d   :  { %v2058_v45 = vadd.f32 %v2942_v13, %v2277_v51  ;;  %v2052_v43 = vpop.f32.mrb[53].mxu0 }
 0x57e   :  { %v2053_v61 = vadd.f32 %v2277_v51, %v2052_v43 }
 0x57f   :  { %2116 = vst.msk [vmem:[%s4448_s7 + $0x28] sm:$0xff] %vm103_vm0, %v2058_v45 }
 0x580   :  { %2115 = vst.msk [vmem:[%s4448_s7 + $0x20] sm:$0xff] %vm103_vm0, %v2053_v61  ;;  %v2945_v2 = vpop.f32.mrb[54].mxu0 }
 0x581   :  { %v2068_v57 = vadd.f32 %v2945_v2, %v2277_v51  ;;  %v2062_v21 = vpop.f32.mrb[55].mxu0 }
 0x582   :  { %v2063_v17 = vadd.f32 %v2277_v51, %v2062_v21 }
 0x583   :  { %2118 = vst.msk [vmem:[%s4448_s7 + $0x38] sm:$0xff] %vm103_vm0, %v2068_v57 }
 0x584   :  { %2117 = vst.msk [vmem:[%s4448_s7 + $0x30] sm:$0xff] %vm103_vm0, %v2063_v17  ;;  %v2948_v9 = vpop.f32.mrb[56].mxu0 }
 0x585   :  { %v2078_v3 = vadd.f32 %v2948_v9, %v2277_v51  ;;  %v2072_v48 = vpop.f32.mrb[57].mxu0 }
 0x586   :  { %v2073_v46 = vadd.f32 %v2277_v51, %v2072_v48 }
 0x587   :  { %2120 = vst.msk [vmem:[%s4448_s7 + $0x48] sm:$0xff] %vm103_vm0, %v2078_v3 }
 0x588   :  { %2119 = vst.msk [vmem:[%s4448_s7 + $0x40] sm:$0xff] %vm103_vm0, %v2073_v46  ;;  %v2951_v27 = vpop.f32.mrb[58].mxu0 }
 0x589   :  { %v2088_v49 = vadd.f32 %v2951_v27, %v2277_v51  ;;  %v2082_v5 = vpop.f32.mrb[59].mxu0 }
 0x58a   :  { %v2083_v15 = vadd.f32 %v2277_v51, %v2082_v5 }
 0x58b   :  { %2122 = vst.msk [vmem:[%s4448_s7 + $0x58] sm:$0xff] %vm103_vm0, %v2088_v49 }
 0x58c   :  { %2121 = vst.msk [vmem:[%s4448_s7 + $0x50] sm:$0xff] %vm103_vm0, %v2083_v15  ;;  %v2954_v55 = vpop.f32.mrb[60].mxu0 }
 0x58d   :  { %v2098_v25 = vadd.f32 %v2954_v55, %v2277_v51  ;;  %v2092_v20 = vpop.f32.mrb[61].mxu0 }
 0x58e   :  { %v2093_v30 = vadd.f32 %v2277_v51, %v2092_v20 }
 0x58f   :  { %2124 = vst.msk [vmem:[%s4448_s7 + $0x68] sm:$0xff] %vm103_vm0, %v2098_v25 }
 0x590   :  { %2123 = vst.msk [vmem:[%s4448_s7 + $0x60] sm:$0xff] %vm103_vm0, %v2093_v30  ;;  %v2957_v22 = vpop.f32.mrb[62].mxu0 }
 0x591   :  { %v2108_v58 = vadd.f32 %v2957_v22, %v2277_v51  ;;  %v2102_v63 = vpop.f32.mrb[63].mxu0 }
 0x592   :  { %v2103_v6 = vadd.f32 %v2277_v51, %v2102_v63 }
 0x593   :  { %2126 = vst.msk [vmem:[%s4448_s7 + $0x78] sm:$0xff] %vm103_vm0, %v2108_v58 }
 0x594   :  { %2125 = vst.msk [vmem:[%s4448_s7 + $0x70] sm:$0xff] %vm103_vm0, %v2103_v6 }
 0x595   :  { %2131 = vsyncpa [#allocation3], 1 }
 0x596   :  { %2132 = vsyncpa [#allocation5], 1 }

</bundles_post_ra>
